<compile_context>
chip_gen: v6e
topology: v6e:2x2x1
jax: 0.10.0
libtpu: 0.0.40
codegen_flags: <defaults>
</compile_context>

<pallas_src>
import functools

import jax
import jax.numpy as jnp
import numpy as np
from jax import lax
from jax.experimental import pallas as pl
from jax.experimental.pallas import tpu as pltpu


def _round_up(x, m):
    return ((x + m - 1) // m) * m


def _pad_to(x, shape):
    pads = [(0, s - d) for d, s in zip(x.shape, shape)]
    if any(p != (0, 0) for p in pads):
        return jnp.pad(x, pads)
    return x


# ----------------------------------------------------------------------------
# Pallas kernel: one grid step = one (batch-shard, time-chunk). The recurrence
# runs in a fori_loop over the chunk; hidden state is carried in VMEM scratch.
# Only the truly serial work stays here: h @ W_hh + gates + blend.
# ----------------------------------------------------------------------------
def _gru_decoder_kernel(
    gi_ref,      # [Tc, Bsh, 3Hp] bf16  precomputed x-gate term (r|z|n); b_ih + b_h{r,z} folded in
    h0_ref,      # [Bsh, Hp]      f32   initial hidden (bridge), per batch shard
    whh_ref,     # [Hp, 3Hp]      bf16  fused hidden->gate weights
    bhn_ref,     # [1, Hp]        f32   b_hn (must stay inside r * (.) — PyTorch GRU)
    hseq_ref,    # [Tc, Bsh, Hp]  bf16  OUT: hidden-state sequence for this chunk
    hfinal_ref,  # [Bsh, Hp]      f32   OUT: final hidden state
    h_scr,       # VMEM scratch [Bsh, Hp] f32 — hidden carried across time chunks
    *, hp, tc, t_total, mask_tail, unroll,
):
    c = pl.program_id(1)                     # time-chunk index ("arbitrary" axis)

    @pl.when(c == 0)
    def _():
        h_scr[...] = h0_ref[...]

    def step(i, carry):
        h = h_scr[...]                                            # [Bsh, Hp] f32
        # Single fused (r|z|n) hidden matmul on the MXU: bf16 operands, f32 accum.
        gh = jnp.dot(h.astype(jnp.bfloat16), whh_ref[...],
                     preferred_element_type=jnp.float32)
        gi = gi_ref[i].astype(jnp.float32)                        # [Bsh, 3Hp]

        # PyTorch nn.GRU gate order (r, z, n); slices are 128-lane aligned (Hp%128==0).
        r = jax.nn.sigmoid(gi[:, :hp] + gh[:, :hp])
        z = jax.nn.sigmoid(gi[:, hp:2 * hp] + gh[:, hp:2 * hp])
        n = jnp.tanh(gi[:, 2 * hp:] + r * (gh[:, 2 * hp:] + bhn_ref[...]))
        h_new = (1.0 - z) * n + z * h

        if mask_tail:                      # time padding: freeze h on padded steps
            t_global = c * tc + i
            h_new = jnp.where(t_global < t_total, h_new, h)
        h_scr[...] = h_new

        # Only store the hidden state; the pre_output projection (W_ph) is done
        # once in the wrapper as a big batched matmul, off the serial path.
        hseq_ref[i] = h_new.astype(hseq_ref.dtype)
        return carry

    lax.fori_loop(0, tc, step, 0, unroll=unroll)

    @pl.when(c == pl.num_programs(1) - 1)   # write final hidden once, not per step
    def _():
        hfinal_ref[...] = h_scr[...]


# ----------------------------------------------------------------------------
# Wrapper
# ----------------------------------------------------------------------------
def gru_decoder_forward(params, trg, encoder_hidden, src_mask, trg_mask,
                        encoder_final, *, tc_max=256, num_batch_shards=None):
    """Eval-mode forward of GRUDecoder(attention=None, bridge=True, num_layers=1).

    trg: int32 [B, T]; encoder_final: [1, B, 2H].
    encoder_hidden / src_mask / trg_mask unused on the no-attention path.
    Returns (outputs [B, T, H], hidden [1, B, H]).
    """
    del encoder_hidden, src_mask, trg_mask      # unused when attention is None
    B, T = trg.shape
    E = params["embed"].shape[1]
    H = params["w_bridge"].shape[1]

    Hp = _round_up(H, 128)     # lane-pad hidden size (lane-dense, unmasked stores)
    Bp = _round_up(B, 8)       # sublane-pad batch

    # Batch sharding (v7x megacore) only when each shard stays throughput-bound;
    # the per-step [Bsh,Hp]@[Hp,3Hp] matmul is latency-bound at small Bsh and
    # sharding would only duplicate weight DMAs. v5e/v6e (1 TC) always use 1.
    if num_batch_shards is None:
        num_batch_shards = 2 if Bp >= 256 else 1
    nb = num_batch_shards if (num_batch_shards >= 1
                              and Bp % (8 * num_batch_shards) == 0) else 1
    Bsh = Bp // nb

    f32, bf16 = jnp.float32, jnp.bfloat16

    # ---- VMEM-aware time-chunk size + explicit scoped-VMEM limit ----
    BF, F4 = 2, 4
    const_bytes = (2 * Hp * 3 * Hp * BF      # w_hh (default double-buffered)
                   + 2 * Hp * F4             # b_hn
                   + 2 * Bsh * Hp * F4       # h0
                   + 2 * Bsh * Hp * F4       # hfinal output
                   + Bsh * Hp * F4)          # h_scr scratch
    per_t_bytes = 2 * Bsh * (3 * Hp + Hp) * BF   # double-buffered gi + hseq (bf16)
    vmem_budget = 48 << 20                   # fits v7x 64 MiB physical VMEM
    tc_fit = max(1, (vmem_budget - const_bytes) // per_t_bytes)
    tc = int(max(1, min(T, tc_max, tc_fit)))
    T_pad = _round_up(T, tc)
    nc = T_pad // tc
    mask_tail = (T_pad != T)
    vmem_limit = int(min(max(const_bytes + tc * per_t_bytes + (8 << 20), 32 << 20),
                         100 << 20))

    # ---- gate-packed, lane-padded parameters (gates r|z|n along last axis) ----
    def pack_gates(w, rows_pad=None):        # [rows, 3H] -> [rows(_pad), 3Hp]
        rows = w.shape[0]
        w3 = _pad_to(w.reshape(rows, 3, H), (rows, 3, Hp)).reshape(rows, 3 * Hp)
        return _pad_to(w3, (rows_pad, 3 * Hp)) if rows_pad is not None else w3

    w_ih = pack_gates(params["w_ih"].astype(f32))                 # [E+2H, 3Hp]
    w_hh = pack_gates(params["w_hh"].astype(f32), rows_pad=Hp)    # [Hp, 3Hp]
    b_ih_p = pack_gates(params["b_ih"].astype(f32)[None])[0]      # [3Hp]
    b_hh_p = pack_gates(params["b_hh"].astype(f32)[None])[0]      # [3Hp]
    # Fold b_ih (all gates) + b_h{r,z} into the hoisted gi; b_hn must stay
    # inside r*(.) so it is passed to the kernel separately.
    b_gi = b_ih_p.at[:2 * Hp].add(b_hh_p[:2 * Hp])                # [3Hp]
    b_hn = b_hh_p[2 * Hp:].reshape(1, Hp)                         # [1, Hp]

    w_br = _pad_to(params["w_bridge"].astype(f32), (2 * H, Hp))   # [2H, Hp]
    b_br = _pad_to(params["b_bridge"].astype(f32), (Hp,))

    w_pre = params["w_pre"].astype(f32)                           # [E+H+2H, H]
    w_pe = w_pre[:E]                                              # [E, H]
    w_ph = _pad_to(w_pre[E:E + H], (Hp, H))                       # [Hp, H] (zero-padded rows)
    w_pc = w_pre[E + H:]                                          # [2H, H]
    b_pre = params["b_pre"].astype(f32)                           # [H]

    # ---- hoisted, loop-invariant work: big one-shot XLA matmuls ----
    emb_tm = params["embed"][trg.T].astype(f32)       # [T, B, E] (gathered time-major)
    ctx = encoder_final[-1].astype(f32)               # [B, 2H]   (context, no attention)

    h0 = jnp.tanh(ctx @ w_br + b_br)                              # [B, Hp]
    gi = emb_tm @ w_ih[:E] + (ctx @ w_ih[E:] + b_gi)[None]        # [T, B, 3Hp]
    # pre_output base (emb + ctx contributions), computed batch-major directly.
    pre_base = (jnp.einsum('tbe,eh->bth', emb_tm, w_pe)
                + (ctx @ w_pc + b_pre)[:, None, :])               # [B, T, H]

    # Pad batch/time; stream activations + in-kernel weights as bf16 (MXU-native).
    gi = _pad_to(gi, (T_pad, Bp, 3 * Hp)).astype(bf16)
    h0 = _pad_to(h0, (Bp, Hp))
    whh_b = w_hh.astype(bf16)

    if tc <= 16:
        unroll = True            # short chunks: fully unroll
    elif Hp >= 512:
        unroll = 2               # large Hp: live set near 64-vreg budget -> avoid spills
    else:
        unroll = 8

    kernel = functools.partial(
        _gru_decoder_kernel, hp=Hp, tc=tc, t_total=T, mask_tail=mask_tail,
        unroll=unroll)

    h_seq, h_final = pl.pallas_call(
        kernel,
        out_shape=(
            jax.ShapeDtypeStruct((T_pad, Bp, Hp), bf16),   # hidden-state sequence
            jax.ShapeDtypeStruct((Bp, Hp), f32),           # final hidden
        ),
        grid=(nb, nc),
        in_specs=[
            pl.BlockSpec((tc, Bsh, 3 * Hp), lambda b, c: (c, b, 0)),   # gi
            pl.BlockSpec((Bsh, Hp), lambda b, c: (b, 0)),              # h0
            pl.BlockSpec((Hp, 3 * Hp), lambda b, c: (0, 0)),           # w_hh (const)
            pl.BlockSpec((1, Hp), lambda b, c: (0, 0)),                # b_hn (const)
        ],
        out_specs=(
            pl.BlockSpec((tc, Bsh, Hp), lambda b, c: (c, b, 0)),       # h_seq (time-major)
            pl.BlockSpec((Bsh, Hp), lambda b, c: (b, 0)),              # final hidden
        ),
        scratch_shapes=[pltpu.VMEM((Bsh, Hp), f32)],
        compiler_params=pltpu.CompilerParams(
            dimension_semantics=("parallel", "arbitrary"),
            vmem_limit_bytes=vmem_limit),
    )(gi, h0, whh_b, b_hn)

    # pre_output projection of the whole hidden sequence: one large MXU-friendly
    # matmul; 'tbh,hk->btk' also folds the time-major -> batch-major transpose
    # (no separate [T,B,H] transpose pass through HBM).
    outputs = (jnp.einsum('tbh,hk->btk', h_seq[:T, :B], w_ph.astype(bf16),
                          preferred_element_type=f32)
               + pre_base)                                        # [B, T, H]
    hidden = h_final[:B, :H][None]                                # [1, B, H]
    return outputs, hidden


# ----------------------------------------------------------------------------
# Pure-JAX f32 reference (same math, no Pallas) for the correctness check
# ----------------------------------------------------------------------------
def gru_decoder_reference(params, trg, encoder_final):
    B, T = trg.shape
    H = params["w_bridge"].shape[1]
    emb = params["embed"][trg]                     # [B, T, E]
    ctx = encoder_final[-1]                        # [B, 2H]
    h = jnp.tanh(ctx @ params["w_bridge"] + params["b_bridge"])
    outs = []
    for t in range(T):
        e = emb[:, t]
        gi = jnp.concatenate([e, ctx], axis=1) @ params["w_ih"] + params["b_ih"]
        gh = h @ params["w_hh"] + params["b_hh"]
        r = jax.nn.sigmoid(gi[:, :H] + gh[:, :H])
        z = jax.nn.sigmoid(gi[:, H:2 * H] + gh[:, H:2 * H])
        n = jnp.tanh(gi[:, 2 * H:] + r * gh[:, 2 * H:])
        h = (1.0 - z) * n + z * h
        y = jnp.concatenate([e, h, ctx], axis=1) @ params["w_pre"] + params["b_pre"]
        outs.append(y)
    return jnp.stack(outs, axis=1), h[None]


# ----------------------------------------------------------------------------
def make_params(key, V, E, H):
    ks = jax.random.split(key, 9)
    s = 0.1
    return {
        "embed": jax.random.normal(ks[0], (V, E), jnp.float32) * s,
        # nn.GRU on input [emb (E), context (2H)]; weights stored pre-transposed
        # for x @ W, gates packed (r|z|n) along the last axis (PyTorch gate order).
        "w_ih": jax.random.normal(ks[1], (E + 2 * H, 3 * H), jnp.float32) * s,
        "b_ih": jax.random.normal(ks[2], (3 * H,), jnp.float32) * s,
        "w_hh": jax.random.normal(ks[3], (H, 3 * H), jnp.float32) * s,
        "b_hh": jax.random.normal(ks[4], (3 * H,), jnp.float32) * s,
        # bridge: Linear(2H -> H)
        "w_bridge": jax.random.normal(ks[5], (2 * H, H), jnp.float32) * s,
        "b_bridge": jax.random.normal(ks[6], (H,), jnp.float32) * s,
        # pre_output_layer: Linear(E + H + 2H -> H); input order [emb, gru_out, ctx]
        "w_pre": jax.random.normal(ks[7], (E + H + 2 * H, H), jnp.float32) * s,
        "b_pre": jax.random.normal(ks[8], (H,), jnp.float32) * s,
    }


if __name__ == "__main__":
    V, E, H = 20, 16, 32     # trg_vocab_size, embed_size, hidden_size
    B, T, S = 2, 6, 5        # batch, target len, source len

    key = jax.random.PRNGKey(0)
    kp, kt, ke = jax.random.split(key, 3)

    params = make_params(kp, V, E, H)
    trg = jax.random.randint(kt, (B, T), 0, V, jnp.int32)
    encoder_hidden = jax.random.normal(ke, (B, S, 2 * H), jnp.float32)  # unused (no attention)
    src_mask = jnp.ones((B, 1, S), jnp.float32)                         # unused (no attention)
    trg_mask = jnp.ones((B, 1, T), jnp.float32)                         # unused
    encoder_final = jax.random.normal(jax.random.fold_in(ke, 1),
                                      (1, B, 2 * H), jnp.float32)

    fwd = jax.jit(functools.partial(gru_decoder_forward, params))
    outputs, hidden = fwd(trg, encoder_hidden, src_mask, trg_mask, encoder_final)
    outputs = jax.block_until_ready(outputs)
    hidden = jax.block_until_ready(hidden)

    ref_out, ref_hid = gru_decoder_reference(params, trg, encoder_final)

    assert outputs.shape == (B, T, H) and hidden.shape == (1, B, H)
    # bf16 weights + bf16 streamed activations in the recurrence -> looser tolerance
    np.testing.assert_allclose(np.asarray(outputs), np.asarray(ref_out),
                               rtol=3e-2, atol=3e-2)
    np.testing.assert_allclose(np.asarray(hidden), np.asarray(ref_hid),
                               rtol=3e-2, atol=3e-2)

    print("KERNEL_OK")
</pallas_src>

<mosaic_0001>
module attributes {stable_mosaic.version = 11 : i64} {
  func.func @_gru_decoder_kernel(%arg0: i32, %arg1: i32, %arg2: memref<6x8x384xbf16, #tpu.memory_space<vmem>>, %arg3: memref<8x128xf32, #tpu.memory_space<vmem>>, %arg4: memref<128x384xbf16, #tpu.memory_space<vmem>>, %arg5: memref<1x128xf32, #tpu.memory_space<vmem>>, %arg6: memref<6x8x128xbf16, #tpu.memory_space<vmem>>, %arg7: memref<8x128xf32, #tpu.memory_space<vmem>>, %arg8: memref<8x128xf32, #tpu.memory_space<vmem>>) attributes {dimension_semantics = [#tpu.dimension_semantics<parallel>, #tpu.dimension_semantics<arbitrary>], iteration_bounds = array<i64: 1, 1>, scalar_prefetch = 0 : i64, scratch_operands = 1 : i64, tpu.core_type = #tpu.core_type<tc>, window_params = [{transform_indices = @transform_0, window_bounds = array<i64: 6, 8, 384>}, {transform_indices = @transform_1, window_bounds = array<i64: 8, 128>}, {pipeline_mode = #tpu.pipeline_mode<synchronous>, transform_indices = @transform_2, window_bounds = array<i64: 128, 384>}, {pipeline_mode = #tpu.pipeline_mode<synchronous>, transform_indices = @transform_3, window_bounds = array<i64: 1, 128>}, {transform_indices = @transform_4, window_bounds = array<i64: 6, 8, 128>}, {transform_indices = @transform_5, window_bounds = array<i64: 8, 128>}]} {
    %c0_i32 = arith.constant 0 : i32
    %0 = arith.cmpi eq, %arg1, %c0_i32 : i32
    %1 = arith.extui %0 : i1 to i32
    %c0_i32_0 = arith.constant 0 : i32
    %2 = arith.cmpi ne, %1, %c0_i32_0 : i32
    scf.if %2 {
      %c0_98 = arith.constant 0 : index
      %c0_99 = arith.constant 0 : index
      %264 = vector.load %arg3[%c0_98, %c0_99] : memref<8x128xf32, #tpu.memory_space<vmem>>, vector<8x128xf32>
      %c0_100 = arith.constant 0 : index
      %c0_101 = arith.constant 0 : index
      %265 = vector.load %arg8[%c0_100, %c0_101] : memref<8x128xf32, #tpu.memory_space<vmem>>, vector<8x128xf32>
      tpu.vector_store %arg8[%c0_100, %c0_101], %264 {strides = array<i32>} : memref<8x128xf32, #tpu.memory_space<vmem>>, vector<8x128xf32>,
    } else {
    }
    %c0_i32_1 = arith.constant 0 : i32
    %c0 = arith.constant 0 : index
    %c0_2 = arith.constant 0 : index
    %3 = vector.load %arg8[%c0, %c0_2] : memref<8x128xf32, #tpu.memory_space<vmem>>, vector<8x128xf32>
    %4 = arith.truncf %3 : vector<8x128xf32> to vector<8x128xbf16>
    %c0_3 = arith.constant 0 : index
    %c0_4 = arith.constant 0 : index
    %5 = vector.load %arg4[%c0_3, %c0_4] : memref<128x384xbf16, #tpu.memory_space<vmem>>, vector<128x384xbf16>
    %cst = arith.constant dense<0.000000e+00> : vector<8x384xf32>
    %6 = tpu.matmul %4, %5, %cst {dimension_numbers = #tpu.dot_dimension_numbers<[1], [0], [0], [1], [0, 0, 1, 1], [], []>} : vector<8x128xbf16>, vector<128x384xbf16>, vector<8x384xf32> -> vector<8x384xf32>
    %7 = arith.index_cast %c0_i32_1 : i32 to index
    %c0_5 = arith.constant 0 : index
    %c0_6 = arith.constant 0 : index
    %8 = vector.load %arg2[%7, %c0_5, %c0_6] : memref<6x8x384xbf16, #tpu.memory_space<vmem>>, vector<1x8x384xbf16>
    %9 = vector.shape_cast %8 : vector<1x8x384xbf16> to vector<8x384xbf16>
    %10 = arith.extf %9 : vector<8x384xbf16> to vector<8x384xf32>
    %11 = vector.extract_strided_slice %10 {offsets = [0, 0], sizes = [8, 128], strides = [1, 1]} : vector<8x384xf32> to vector<8x128xf32>
    %12 = vector.extract_strided_slice %6 {offsets = [0, 0], sizes = [8, 128], strides = [1, 1]} : vector<8x384xf32> to vector<8x128xf32>
    %13 = arith.addf %11, %12 : vector<8x128xf32>
    %14 = arith.negf %13 : vector<8x128xf32>
    %15 = math.exp %14 : vector<8x128xf32>
    %cst_7 = arith.constant 1.000000e+00 : f32
    %16 = vector.broadcast %cst_7 : f32 to vector<8x128xf32>
    %17 = arith.addf %16, %15 : vector<8x128xf32>
    %18 = arith.divf %16, %17 : vector<8x128xf32>
    %19 = vector.extract_strided_slice %10 {offsets = [0, 128], sizes = [8, 128], strides = [1, 1]} : vector<8x384xf32> to vector<8x128xf32>
    %20 = vector.extract_strided_slice %6 {offsets = [0, 128], sizes = [8, 128], strides = [1, 1]} : vector<8x384xf32> to vector<8x128xf32>
    %21 = arith.addf %19, %20 : vector<8x128xf32>
    %22 = arith.negf %21 : vector<8x128xf32>
    %23 = math.exp %22 : vector<8x128xf32>
    %cst_8 = arith.constant 1.000000e+00 : f32
    %24 = vector.broadcast %cst_8 : f32 to vector<8x128xf32>
    %25 = arith.addf %24, %23 : vector<8x128xf32>
    %26 = arith.divf %24, %25 : vector<8x128xf32>
    %27 = vector.extract_strided_slice %10 {offsets = [0, 256], sizes = [8, 128], strides = [1, 1]} : vector<8x384xf32> to vector<8x128xf32>
    %28 = vector.extract_strided_slice %6 {offsets = [0, 256], sizes = [8, 128], strides = [1, 1]} : vector<8x384xf32> to vector<8x128xf32>
    %c0_9 = arith.constant 0 : index
    %c0_10 = arith.constant 0 : index
    %29 = vector.load %arg5[%c0_9, %c0_10] : memref<1x128xf32, #tpu.memory_space<vmem>>, vector<1x128xf32>
    %30 = vector.broadcast %29 : vector<1x128xf32> to vector<8x128xf32>
    %31 = arith.addf %28, %30 : vector<8x128xf32>
    %32 = arith.mulf %18, %31 : vector<8x128xf32>
    %33 = arith.addf %27, %32 : vector<8x128xf32>
    %34 = math.tanh %33 : vector<8x128xf32>
    %cst_11 = arith.constant 1.000000e+00 : f32
    %35 = vector.broadcast %cst_11 : f32 to vector<8x128xf32>
    %36 = arith.subf %35, %26 : vector<8x128xf32>
    %37 = arith.mulf %36, %34 : vector<8x128xf32>
    %38 = arith.mulf %26, %3 : vector<8x128xf32>
    %39 = arith.addf %37, %38 : vector<8x128xf32>
    %c0_12 = arith.constant 0 : index
    %c0_13 = arith.constant 0 : index
    %40 = vector.load %arg8[%c0_12, %c0_13] : memref<8x128xf32, #tpu.memory_space<vmem>>, vector<8x128xf32>
    tpu.vector_store %arg8[%c0_12, %c0_13], %39 {strides = array<i32>} : memref<8x128xf32, #tpu.memory_space<vmem>>, vector<8x128xf32>,
    %41 = arith.truncf %39 : vector<8x128xf32> to vector<8x128xbf16>
    %42 = arith.index_cast %c0_i32_1 : i32 to index
    %c0_14 = arith.constant 0 : index
    %c0_15 = arith.constant 0 : index
    %43 = vector.load %arg6[%42, %c0_14, %c0_15] : memref<6x8x128xbf16, #tpu.memory_space<vmem>>, vector<1x8x128xbf16>
    %44 = vector.shape_cast %43 : vector<1x8x128xbf16> to vector<8x128xbf16>
    %45 = vector.shape_cast %41 : vector<8x128xbf16> to vector<1x8x128xbf16>
    tpu.vector_store %arg6[%42, %c0_14, %c0_15], %45 {strides = array<i32>} : memref<6x8x128xbf16, #tpu.memory_space<vmem>>, vector<1x8x128xbf16>,
    %c1_i32 = arith.constant 1 : i32
    %c0_16 = arith.constant 0 : index
    %c0_17 = arith.constant 0 : index
    %46 = vector.load %arg8[%c0_16, %c0_17] : memref<8x128xf32, #tpu.memory_space<vmem>>, vector<8x128xf32>
    %47 = arith.truncf %46 : vector<8x128xf32> to vector<8x128xbf16>
    %c0_18 = arith.constant 0 : index
    %c0_19 = arith.constant 0 : index
    %48 = vector.load %arg4[%c0_18, %c0_19] : memref<128x384xbf16, #tpu.memory_space<vmem>>, vector<128x384xbf16>
    %cst_20 = arith.constant dense<0.000000e+00> : vector<8x384xf32>
    %49 = tpu.matmul %47, %48, %cst_20 {dimension_numbers = #tpu.dot_dimension_numbers<[1], [0], [0], [1], [0, 0, 1, 1], [], []>} : vector<8x128xbf16>, vector<128x384xbf16>, vector<8x384xf32> -> vector<8x384xf32>
    %50 = arith.index_cast %c1_i32 : i32 to index
    %c0_21 = arith.constant 0 : index
    %c0_22 = arith.constant 0 : index
    %51 = vector.load %arg2[%50, %c0_21, %c0_22] : memref<6x8x384xbf16, #tpu.memory_space<vmem>>, vector<1x8x384xbf16>
    %52 = vector.shape_cast %51 : vector<1x8x384xbf16> to vector<8x384xbf16>
    %53 = arith.extf %52 : vector<8x384xbf16> to vector<8x384xf32>
    %54 = vector.extract_strided_slice %53 {offsets = [0, 0], sizes = [8, 128], strides = [1, 1]} : vector<8x384xf32> to vector<8x128xf32>
    %55 = vector.extract_strided_slice %49 {offsets = [0, 0], sizes = [8, 128], strides = [1, 1]} : vector<8x384xf32> to vector<8x128xf32>
    %56 = arith.addf %54, %55 : vector<8x128xf32>
    %57 = arith.negf %56 : vector<8x128xf32>
    %58 = math.exp %57 : vector<8x128xf32>
    %cst_23 = arith.constant 1.000000e+00 : f32
    %59 = vector.broadcast %cst_23 : f32 to vector<8x128xf32>
    %60 = arith.addf %59, %58 : vector<8x128xf32>
    %61 = arith.divf %59, %60 : vector<8x128xf32>
    %62 = vector.extract_strided_slice %53 {offsets = [0, 128], sizes = [8, 128], strides = [1, 1]} : vector<8x384xf32> to vector<8x128xf32>
    %63 = vector.extract_strided_slice %49 {offsets = [0, 128], sizes = [8, 128], strides = [1, 1]} : vector<8x384xf32> to vector<8x128xf32>
    %64 = arith.addf %62, %63 : vector<8x128xf32>
    %65 = arith.negf %64 : vector<8x128xf32>
    %66 = math.exp %65 : vector<8x128xf32>
    %cst_24 = arith.constant 1.000000e+00 : f32
    %67 = vector.broadcast %cst_24 : f32 to vector<8x128xf32>
    %68 = arith.addf %67, %66 : vector<8x128xf32>
    %69 = arith.divf %67, %68 : vector<8x128xf32>
    %70 = vector.extract_strided_slice %53 {offsets = [0, 256], sizes = [8, 128], strides = [1, 1]} : vector<8x384xf32> to vector<8x128xf32>
    %71 = vector.extract_strided_slice %49 {offsets = [0, 256], sizes = [8, 128], strides = [1, 1]} : vector<8x384xf32> to vector<8x128xf32>
    %c0_25 = arith.constant 0 : index
    %c0_26 = arith.constant 0 : index
    %72 = vector.load %arg5[%c0_25, %c0_26] : memref<1x128xf32, #tpu.memory_space<vmem>>, vector<1x128xf32>
    %73 = vector.broadcast %72 : vector<1x128xf32> to vector<8x128xf32>
    %74 = arith.addf %71, %73 : vector<8x128xf32>
    %75 = arith.mulf %61, %74 : vector<8x128xf32>
    %76 = arith.addf %70, %75 : vector<8x128xf32>
    %77 = math.tanh %76 : vector<8x128xf32>
    %cst_27 = arith.constant 1.000000e+00 : f32
    %78 = vector.broadcast %cst_27 : f32 to vector<8x128xf32>
    %79 = arith.subf %78, %69 : vector<8x128xf32>
    %80 = arith.mulf %79, %77 : vector<8x128xf32>
    %81 = arith.mulf %69, %46 : vector<8x128xf32>
    %82 = arith.addf %80, %81 : vector<8x128xf32>
    %c0_28 = arith.constant 0 : index
    %c0_29 = arith.constant 0 : index
    %83 = vector.load %arg8[%c0_28, %c0_29] : memref<8x128xf32, #tpu.memory_space<vmem>>, vector<8x128xf32>
    tpu.vector_store %arg8[%c0_28, %c0_29], %82 {strides = array<i32>} : memref<8x128xf32, #tpu.memory_space<vmem>>, vector<8x128xf32>,
    %84 = arith.truncf %82 : vector<8x128xf32> to vector<8x128xbf16>
    %85 = arith.index_cast %c1_i32 : i32 to index
    %c0_30 = arith.constant 0 : index
    %c0_31 = arith.constant 0 : index
    %86 = vector.load %arg6[%85, %c0_30, %c0_31] : memref<6x8x128xbf16, #tpu.memory_space<vmem>>, vector<1x8x128xbf16>
    %87 = vector.shape_cast %86 : vector<1x8x128xbf16> to vector<8x128xbf16>
    %88 = vector.shape_cast %84 : vector<8x128xbf16> to vector<1x8x128xbf16>
    tpu.vector_store %arg6[%85, %c0_30, %c0_31], %88 {strides = array<i32>} : memref<6x8x128xbf16, #tpu.memory_space<vmem>>, vector<1x8x128xbf16>,
    %c2_i32 = arith.constant 2 : i32
    %c0_32 = arith.constant 0 : index
    %c0_33 = arith.constant 0 : index
    %89 = vector.load %arg8[%c0_32, %c0_33] : memref<8x128xf32, #tpu.memory_space<vmem>>, vector<8x128xf32>
    %90 = arith.truncf %89 : vector<8x128xf32> to vector<8x128xbf16>
    %c0_34 = arith.constant 0 : index
    %c0_35 = arith.constant 0 : index
    %91 = vector.load %arg4[%c0_34, %c0_35] : memref<128x384xbf16, #tpu.memory_space<vmem>>, vector<128x384xbf16>
    %cst_36 = arith.constant dense<0.000000e+00> : vector<8x384xf32>
    %92 = tpu.matmul %90, %91, %cst_36 {dimension_numbers = #tpu.dot_dimension_numbers<[1], [0], [0], [1], [0, 0, 1, 1], [], []>} : vector<8x128xbf16>, vector<128x384xbf16>, vector<8x384xf32> -> vector<8x384xf32>
    %93 = arith.index_cast %c2_i32 : i32 to index
    %c0_37 = arith.constant 0 : index
    %c0_38 = arith.constant 0 : index
    %94 = vector.load %arg2[%93, %c0_37, %c0_38] : memref<6x8x384xbf16, #tpu.memory_space<vmem>>, vector<1x8x384xbf16>
    %95 = vector.shape_cast %94 : vector<1x8x384xbf16> to vector<8x384xbf16>
    %96 = arith.extf %95 : vector<8x384xbf16> to vector<8x384xf32>
    %97 = vector.extract_strided_slice %96 {offsets = [0, 0], sizes = [8, 128], strides = [1, 1]} : vector<8x384xf32> to vector<8x128xf32>
    %98 = vector.extract_strided_slice %92 {offsets = [0, 0], sizes = [8, 128], strides = [1, 1]} : vector<8x384xf32> to vector<8x128xf32>
    %99 = arith.addf %97, %98 : vector<8x128xf32>
    %100 = arith.negf %99 : vector<8x128xf32>
    %101 = math.exp %100 : vector<8x128xf32>
    %cst_39 = arith.constant 1.000000e+00 : f32
    %102 = vector.broadcast %cst_39 : f32 to vector<8x128xf32>
    %103 = arith.addf %102, %101 : vector<8x128xf32>
    %104 = arith.divf %102, %103 : vector<8x128xf32>
    %105 = vector.extract_strided_slice %96 {offsets = [0, 128], sizes = [8, 128], strides = [1, 1]} : vector<8x384xf32> to vector<8x128xf32>
    %106 = vector.extract_strided_slice %92 {offsets = [0, 128], sizes = [8, 128], strides = [1, 1]} : vector<8x384xf32> to vector<8x128xf32>
    %107 = arith.addf %105, %106 : vector<8x128xf32>
    %108 = arith.negf %107 : vector<8x128xf32>
    %109 = math.exp %108 : vector<8x128xf32>
    %cst_40 = arith.constant 1.000000e+00 : f32
    %110 = vector.broadcast %cst_40 : f32 to vector<8x128xf32>
    %111 = arith.addf %110, %109 : vector<8x128xf32>
    %112 = arith.divf %110, %111 : vector<8x128xf32>
    %113 = vector.extract_strided_slice %96 {offsets = [0, 256], sizes = [8, 128], strides = [1, 1]} : vector<8x384xf32> to vector<8x128xf32>
    %114 = vector.extract_strided_slice %92 {offsets = [0, 256], sizes = [8, 128], strides = [1, 1]} : vector<8x384xf32> to vector<8x128xf32>
    %c0_41 = arith.constant 0 : index
    %c0_42 = arith.constant 0 : index
    %115 = vector.load %arg5[%c0_41, %c0_42] : memref<1x128xf32, #tpu.memory_space<vmem>>, vector<1x128xf32>
    %116 = vector.broadcast %115 : vector<1x128xf32> to vector<8x128xf32>
    %117 = arith.addf %114, %116 : vector<8x128xf32>
    %118 = arith.mulf %104, %117 : vector<8x128xf32>
    %119 = arith.addf %113, %118 : vector<8x128xf32>
    %120 = math.tanh %119 : vector<8x128xf32>
    %cst_43 = arith.constant 1.000000e+00 : f32
    %121 = vector.broadcast %cst_43 : f32 to vector<8x128xf32>
    %122 = arith.subf %121, %112 : vector<8x128xf32>
    %123 = arith.mulf %122, %120 : vector<8x128xf32>
    %124 = arith.mulf %112, %89 : vector<8x128xf32>
    %125 = arith.addf %123, %124 : vector<8x128xf32>
    %c0_44 = arith.constant 0 : index
    %c0_45 = arith.constant 0 : index
    %126 = vector.load %arg8[%c0_44, %c0_45] : memref<8x128xf32, #tpu.memory_space<vmem>>, vector<8x128xf32>
    tpu.vector_store %arg8[%c0_44, %c0_45], %125 {strides = array<i32>} : memref<8x128xf32, #tpu.memory_space<vmem>>, vector<8x128xf32>,
    %127 = arith.truncf %125 : vector<8x128xf32> to vector<8x128xbf16>
    %128 = arith.index_cast %c2_i32 : i32 to index
    %c0_46 = arith.constant 0 : index
    %c0_47 = arith.constant 0 : index
    %129 = vector.load %arg6[%128, %c0_46, %c0_47] : memref<6x8x128xbf16, #tpu.memory_space<vmem>>, vector<1x8x128xbf16>
    %130 = vector.shape_cast %129 : vector<1x8x128xbf16> to vector<8x128xbf16>
    %131 = vector.shape_cast %127 : vector<8x128xbf16> to vector<1x8x128xbf16>
    tpu.vector_store %arg6[%128, %c0_46, %c0_47], %131 {strides = array<i32>} : memref<6x8x128xbf16, #tpu.memory_space<vmem>>, vector<1x8x128xbf16>,
    %c3_i32 = arith.constant 3 : i32
    %c0_48 = arith.constant 0 : index
    %c0_49 = arith.constant 0 : index
    %132 = vector.load %arg8[%c0_48, %c0_49] : memref<8x128xf32, #tpu.memory_space<vmem>>, vector<8x128xf32>
    %133 = arith.truncf %132 : vector<8x128xf32> to vector<8x128xbf16>
    %c0_50 = arith.constant 0 : index
    %c0_51 = arith.constant 0 : index
    %134 = vector.load %arg4[%c0_50, %c0_51] : memref<128x384xbf16, #tpu.memory_space<vmem>>, vector<128x384xbf16>
    %cst_52 = arith.constant dense<0.000000e+00> : vector<8x384xf32>
    %135 = tpu.matmul %133, %134, %cst_52 {dimension_numbers = #tpu.dot_dimension_numbers<[1], [0], [0], [1], [0, 0, 1, 1], [], []>} : vector<8x128xbf16>, vector<128x384xbf16>, vector<8x384xf32> -> vector<8x384xf32>
    %136 = arith.index_cast %c3_i32 : i32 to index
    %c0_53 = arith.constant 0 : index
    %c0_54 = arith.constant 0 : index
    %137 = vector.load %arg2[%136, %c0_53, %c0_54] : memref<6x8x384xbf16, #tpu.memory_space<vmem>>, vector<1x8x384xbf16>
    %138 = vector.shape_cast %137 : vector<1x8x384xbf16> to vector<8x384xbf16>
    %139 = arith.extf %138 : vector<8x384xbf16> to vector<8x384xf32>
    %140 = vector.extract_strided_slice %139 {offsets = [0, 0], sizes = [8, 128], strides = [1, 1]} : vector<8x384xf32> to vector<8x128xf32>
    %141 = vector.extract_strided_slice %135 {offsets = [0, 0], sizes = [8, 128], strides = [1, 1]} : vector<8x384xf32> to vector<8x128xf32>
    %142 = arith.addf %140, %141 : vector<8x128xf32>
    %143 = arith.negf %142 : vector<8x128xf32>
    %144 = math.exp %143 : vector<8x128xf32>
    %cst_55 = arith.constant 1.000000e+00 : f32
    %145 = vector.broadcast %cst_55 : f32 to vector<8x128xf32>
    %146 = arith.addf %145, %144 : vector<8x128xf32>
    %147 = arith.divf %145, %146 : vector<8x128xf32>
    %148 = vector.extract_strided_slice %139 {offsets = [0, 128], sizes = [8, 128], strides = [1, 1]} : vector<8x384xf32> to vector<8x128xf32>
    %149 = vector.extract_strided_slice %135 {offsets = [0, 128], sizes = [8, 128], strides = [1, 1]} : vector<8x384xf32> to vector<8x128xf32>
    %150 = arith.addf %148, %149 : vector<8x128xf32>
    %151 = arith.negf %150 : vector<8x128xf32>
    %152 = math.exp %151 : vector<8x128xf32>
    %cst_56 = arith.constant 1.000000e+00 : f32
    %153 = vector.broadcast %cst_56 : f32 to vector<8x128xf32>
    %154 = arith.addf %153, %152 : vector<8x128xf32>
    %155 = arith.divf %153, %154 : vector<8x128xf32>
    %156 = vector.extract_strided_slice %139 {offsets = [0, 256], sizes = [8, 128], strides = [1, 1]} : vector<8x384xf32> to vector<8x128xf32>
    %157 = vector.extract_strided_slice %135 {offsets = [0, 256], sizes = [8, 128], strides = [1, 1]} : vector<8x384xf32> to vector<8x128xf32>
    %c0_57 = arith.constant 0 : index
    %c0_58 = arith.constant 0 : index
    %158 = vector.load %arg5[%c0_57, %c0_58] : memref<1x128xf32, #tpu.memory_space<vmem>>, vector<1x128xf32>
    %159 = vector.broadcast %158 : vector<1x128xf32> to vector<8x128xf32>
    %160 = arith.addf %157, %159 : vector<8x128xf32>
    %161 = arith.mulf %147, %160 : vector<8x128xf32>
    %162 = arith.addf %156, %161 : vector<8x128xf32>
    %163 = math.tanh %162 : vector<8x128xf32>
    %cst_59 = arith.constant 1.000000e+00 : f32
    %164 = vector.broadcast %cst_59 : f32 to vector<8x128xf32>
    %165 = arith.subf %164, %155 : vector<8x128xf32>
    %166 = arith.mulf %165, %163 : vector<8x128xf32>
    %167 = arith.mulf %155, %132 : vector<8x128xf32>
    %168 = arith.addf %166, %167 : vector<8x128xf32>
    %c0_60 = arith.constant 0 : index
    %c0_61 = arith.constant 0 : index
    %169 = vector.load %arg8[%c0_60, %c0_61] : memref<8x128xf32, #tpu.memory_space<vmem>>, vector<8x128xf32>
    tpu.vector_store %arg8[%c0_60, %c0_61], %168 {strides = array<i32>} : memref<8x128xf32, #tpu.memory_space<vmem>>, vector<8x128xf32>,
    %170 = arith.truncf %168 : vector<8x128xf32> to vector<8x128xbf16>
    %171 = arith.index_cast %c3_i32 : i32 to index
    %c0_62 = arith.constant 0 : index
    %c0_63 = arith.constant 0 : index
    %172 = vector.load %arg6[%171, %c0_62, %c0_63] : memref<6x8x128xbf16, #tpu.memory_space<vmem>>, vector<1x8x128xbf16>
    %173 = vector.shape_cast %172 : vector<1x8x128xbf16> to vector<8x128xbf16>
    %174 = vector.shape_cast %170 : vector<8x128xbf16> to vector<1x8x128xbf16>
    tpu.vector_store %arg6[%171, %c0_62, %c0_63], %174 {strides = array<i32>} : memref<6x8x128xbf16, #tpu.memory_space<vmem>>, vector<1x8x128xbf16>,
    %c4_i32 = arith.constant 4 : i32
    %c0_64 = arith.constant 0 : index
    %c0_65 = arith.constant 0 : index
    %175 = vector.load %arg8[%c0_64, %c0_65] : memref<8x128xf32, #tpu.memory_space<vmem>>, vector<8x128xf32>
    %176 = arith.truncf %175 : vector<8x128xf32> to vector<8x128xbf16>
    %c0_66 = arith.constant 0 : index
    %c0_67 = arith.constant 0 : index
    %177 = vector.load %arg4[%c0_66, %c0_67] : memref<128x384xbf16, #tpu.memory_space<vmem>>, vector<128x384xbf16>
    %cst_68 = arith.constant dense<0.000000e+00> : vector<8x384xf32>
    %178 = tpu.matmul %176, %177, %cst_68 {dimension_numbers = #tpu.dot_dimension_numbers<[1], [0], [0], [1], [0, 0, 1, 1], [], []>} : vector<8x128xbf16>, vector<128x384xbf16>, vector<8x384xf32> -> vector<8x384xf32>
    %179 = arith.index_cast %c4_i32 : i32 to index
    %c0_69 = arith.constant 0 : index
    %c0_70 = arith.constant 0 : index
    %180 = vector.load %arg2[%179, %c0_69, %c0_70] : memref<6x8x384xbf16, #tpu.memory_space<vmem>>, vector<1x8x384xbf16>
    %181 = vector.shape_cast %180 : vector<1x8x384xbf16> to vector<8x384xbf16>
    %182 = arith.extf %181 : vector<8x384xbf16> to vector<8x384xf32>
    %183 = vector.extract_strided_slice %182 {offsets = [0, 0], sizes = [8, 128], strides = [1, 1]} : vector<8x384xf32> to vector<8x128xf32>
    %184 = vector.extract_strided_slice %178 {offsets = [0, 0], sizes = [8, 128], strides = [1, 1]} : vector<8x384xf32> to vector<8x128xf32>
    %185 = arith.addf %183, %184 : vector<8x128xf32>
    %186 = arith.negf %185 : vector<8x128xf32>
    %187 = math.exp %186 : vector<8x128xf32>
    %cst_71 = arith.constant 1.000000e+00 : f32
    %188 = vector.broadcast %cst_71 : f32 to vector<8x128xf32>
    %189 = arith.addf %188, %187 : vector<8x128xf32>
    %190 = arith.divf %188, %189 : vector<8x128xf32>
    %191 = vector.extract_strided_slice %182 {offsets = [0, 128], sizes = [8, 128], strides = [1, 1]} : vector<8x384xf32> to vector<8x128xf32>
    %192 = vector.extract_strided_slice %178 {offsets = [0, 128], sizes = [8, 128], strides = [1, 1]} : vector<8x384xf32> to vector<8x128xf32>
    %193 = arith.addf %191, %192 : vector<8x128xf32>
    %194 = arith.negf %193 : vector<8x128xf32>
    %195 = math.exp %194 : vector<8x128xf32>
    %cst_72 = arith.constant 1.000000e+00 : f32
    %196 = vector.broadcast %cst_72 : f32 to vector<8x128xf32>
    %197 = arith.addf %196, %195 : vector<8x128xf32>
    %198 = arith.divf %196, %197 : vector<8x128xf32>
    %199 = vector.extract_strided_slice %182 {offsets = [0, 256], sizes = [8, 128], strides = [1, 1]} : vector<8x384xf32> to vector<8x128xf32>
    %200 = vector.extract_strided_slice %178 {offsets = [0, 256], sizes = [8, 128], strides = [1, 1]} : vector<8x384xf32> to vector<8x128xf32>
    %c0_73 = arith.constant 0 : index
    %c0_74 = arith.constant 0 : index
    %201 = vector.load %arg5[%c0_73, %c0_74] : memref<1x128xf32, #tpu.memory_space<vmem>>, vector<1x128xf32>
    %202 = vector.broadcast %201 : vector<1x128xf32> to vector<8x128xf32>
    %203 = arith.addf %200, %202 : vector<8x128xf32>
    %204 = arith.mulf %190, %203 : vector<8x128xf32>
    %205 = arith.addf %199, %204 : vector<8x128xf32>
    %206 = math.tanh %205 : vector<8x128xf32>
    %cst_75 = arith.constant 1.000000e+00 : f32
    %207 = vector.broadcast %cst_75 : f32 to vector<8x128xf32>
    %208 = arith.subf %207, %198 : vector<8x128xf32>
    %209 = arith.mulf %208, %206 : vector<8x128xf32>
    %210 = arith.mulf %198, %175 : vector<8x128xf32>
    %211 = arith.addf %209, %210 : vector<8x128xf32>
    %c0_76 = arith.constant 0 : index
    %c0_77 = arith.constant 0 : index
    %212 = vector.load %arg8[%c0_76, %c0_77] : memref<8x128xf32, #tpu.memory_space<vmem>>, vector<8x128xf32>
    tpu.vector_store %arg8[%c0_76, %c0_77], %211 {strides = array<i32>} : memref<8x128xf32, #tpu.memory_space<vmem>>, vector<8x128xf32>,
    %213 = arith.truncf %211 : vector<8x128xf32> to vector<8x128xbf16>
    %214 = arith.index_cast %c4_i32 : i32 to index
    %c0_78 = arith.constant 0 : index
    %c0_79 = arith.constant 0 : index
    %215 = vector.load %arg6[%214, %c0_78, %c0_79] : memref<6x8x128xbf16, #tpu.memory_space<vmem>>, vector<1x8x128xbf16>
    %216 = vector.shape_cast %215 : vector<1x8x128xbf16> to vector<8x128xbf16>
    %217 = vector.shape_cast %213 : vector<8x128xbf16> to vector<1x8x128xbf16>
    tpu.vector_store %arg6[%214, %c0_78, %c0_79], %217 {strides = array<i32>} : memref<6x8x128xbf16, #tpu.memory_space<vmem>>, vector<1x8x128xbf16>,
    %c5_i32 = arith.constant 5 : i32
    %c0_80 = arith.constant 0 : index
    %c0_81 = arith.constant 0 : index
    %218 = vector.load %arg8[%c0_80, %c0_81] : memref<8x128xf32, #tpu.memory_space<vmem>>, vector<8x128xf32>
    %219 = arith.truncf %218 : vector<8x128xf32> to vector<8x128xbf16>
    %c0_82 = arith.constant 0 : index
    %c0_83 = arith.constant 0 : index
    %220 = vector.load %arg4[%c0_82, %c0_83] : memref<128x384xbf16, #tpu.memory_space<vmem>>, vector<128x384xbf16>
    %cst_84 = arith.constant dense<0.000000e+00> : vector<8x384xf32>
    %221 = tpu.matmul %219, %220, %cst_84 {dimension_numbers = #tpu.dot_dimension_numbers<[1], [0], [0], [1], [0, 0, 1, 1], [], []>} : vector<8x128xbf16>, vector<128x384xbf16>, vector<8x384xf32> -> vector<8x384xf32>
    %222 = arith.index_cast %c5_i32 : i32 to index
    %c0_85 = arith.constant 0 : index
    %c0_86 = arith.constant 0 : index
    %223 = vector.load %arg2[%222, %c0_85, %c0_86] : memref<6x8x384xbf16, #tpu.memory_space<vmem>>, vector<1x8x384xbf16>
    %224 = vector.shape_cast %223 : vector<1x8x384xbf16> to vector<8x384xbf16>
    %225 = arith.extf %224 : vector<8x384xbf16> to vector<8x384xf32>
    %226 = vector.extract_strided_slice %225 {offsets = [0, 0], sizes = [8, 128], strides = [1, 1]} : vector<8x384xf32> to vector<8x128xf32>
    %227 = vector.extract_strided_slice %221 {offsets = [0, 0], sizes = [8, 128], strides = [1, 1]} : vector<8x384xf32> to vector<8x128xf32>
    %228 = arith.addf %226, %227 : vector<8x128xf32>
    %229 = arith.negf %228 : vector<8x128xf32>
    %230 = math.exp %229 : vector<8x128xf32>
    %cst_87 = arith.constant 1.000000e+00 : f32
    %231 = vector.broadcast %cst_87 : f32 to vector<8x128xf32>
    %232 = arith.addf %231, %230 : vector<8x128xf32>
    %233 = arith.divf %231, %232 : vector<8x128xf32>
    %234 = vector.extract_strided_slice %225 {offsets = [0, 128], sizes = [8, 128], strides = [1, 1]} : vector<8x384xf32> to vector<8x128xf32>
    %235 = vector.extract_strided_slice %221 {offsets = [0, 128], sizes = [8, 128], strides = [1, 1]} : vector<8x384xf32> to vector<8x128xf32>
    %236 = arith.addf %234, %235 : vector<8x128xf32>
    %237 = arith.negf %236 : vector<8x128xf32>
    %238 = math.exp %237 : vector<8x128xf32>
    %cst_88 = arith.constant 1.000000e+00 : f32
    %239 = vector.broadcast %cst_88 : f32 to vector<8x128xf32>
    %240 = arith.addf %239, %238 : vector<8x128xf32>
    %241 = arith.divf %239, %240 : vector<8x128xf32>
    %242 = vector.extract_strided_slice %225 {offsets = [0, 256], sizes = [8, 128], strides = [1, 1]} : vector<8x384xf32> to vector<8x128xf32>
    %243 = vector.extract_strided_slice %221 {offsets = [0, 256], sizes = [8, 128], strides = [1, 1]} : vector<8x384xf32> to vector<8x128xf32>
    %c0_89 = arith.constant 0 : index
    %c0_90 = arith.constant 0 : index
    %244 = vector.load %arg5[%c0_89, %c0_90] : memref<1x128xf32, #tpu.memory_space<vmem>>, vector<1x128xf32>
    %245 = vector.broadcast %244 : vector<1x128xf32> to vector<8x128xf32>
    %246 = arith.addf %243, %245 : vector<8x128xf32>
    %247 = arith.mulf %233, %246 : vector<8x128xf32>
    %248 = arith.addf %242, %247 : vector<8x128xf32>
    %249 = math.tanh %248 : vector<8x128xf32>
    %cst_91 = arith.constant 1.000000e+00 : f32
    %250 = vector.broadcast %cst_91 : f32 to vector<8x128xf32>
    %251 = arith.subf %250, %241 : vector<8x128xf32>
    %252 = arith.mulf %251, %249 : vector<8x128xf32>
    %253 = arith.mulf %241, %218 : vector<8x128xf32>
    %254 = arith.addf %252, %253 : vector<8x128xf32>
    %c0_92 = arith.constant 0 : index
    %c0_93 = arith.constant 0 : index
    %255 = vector.load %arg8[%c0_92, %c0_93] : memref<8x128xf32, #tpu.memory_space<vmem>>, vector<8x128xf32>
    tpu.vector_store %arg8[%c0_92, %c0_93], %254 {strides = array<i32>} : memref<8x128xf32, #tpu.memory_space<vmem>>, vector<8x128xf32>,
    %256 = arith.truncf %254 : vector<8x128xf32> to vector<8x128xbf16>
    %257 = arith.index_cast %c5_i32 : i32 to index
    %c0_94 = arith.constant 0 : index
    %c0_95 = arith.constant 0 : index
    %258 = vector.load %arg6[%257, %c0_94, %c0_95] : memref<6x8x128xbf16, #tpu.memory_space<vmem>>, vector<1x8x128xbf16>
    %259 = vector.shape_cast %258 : vector<1x8x128xbf16> to vector<8x128xbf16>
    %260 = vector.shape_cast %256 : vector<8x128xbf16> to vector<1x8x128xbf16>
    tpu.vector_store %arg6[%257, %c0_94, %c0_95], %260 {strides = array<i32>} : memref<6x8x128xbf16, #tpu.memory_space<vmem>>, vector<1x8x128xbf16>,
    %c6_i32 = arith.constant 6 : i32
    %c0_i32_96 = arith.constant 0 : i32
    %261 = arith.cmpi eq, %arg1, %c0_i32_96 : i32
    %262 = arith.extui %261 : i1 to i32
    %c0_i32_97 = arith.constant 0 : i32
    %263 = arith.cmpi ne, %262, %c0_i32_97 : i32
    scf.if %263 {
      %c0_98 = arith.constant 0 : index
      %c0_99 = arith.constant 0 : index
      %264 = vector.load %arg8[%c0_98, %c0_99] : memref<8x128xf32, #tpu.memory_space<vmem>>, vector<8x128xf32>
      %c0_100 = arith.constant 0 : index
      %c0_101 = arith.constant 0 : index
      %265 = vector.load %arg7[%c0_100, %c0_101] : memref<8x128xf32, #tpu.memory_space<vmem>>, vector<8x128xf32>
      tpu.vector_store %arg7[%c0_100, %c0_101], %264 {strides = array<i32>} : memref<8x128xf32, #tpu.memory_space<vmem>>, vector<8x128xf32>,
    } else {
    }
    return
  }
  func.func @transform_0(%arg0: i32, %arg1: i32) -> (i32, i32, i32) {
    %c0_i32 = arith.constant 0 : i32
    %c0_i32_0 = arith.constant 0 : i32
    return %arg1, %arg0, %c0_i32 : i32, i32, i32
  }
  func.func @transform_1(%arg0: i32, %arg1: i32) -> (i32, i32) {
    %c0_i32 = arith.constant 0 : i32
    %c0_i32_0 = arith.constant 0 : i32
    return %arg0, %c0_i32 : i32, i32
  }
  func.func @transform_2(%arg0: i32, %arg1: i32) -> (i32, i32) {
    %c0_i32 = arith.constant 0 : i32
    %c0_i32_0 = arith.constant 0 : i32
    %c0_i32_1 = arith.constant 0 : i32
    return %c0_i32, %c0_i32_0 : i32, i32
  }
  func.func @transform_3(%arg0: i32, %arg1: i32) -> (i32, i32) {
    %c0_i32 = arith.constant 0 : i32
    %c0_i32_0 = arith.constant 0 : i32
    %c0_i32_1 = arith.constant 0 : i32
    return %c0_i32, %c0_i32_0 : i32, i32
  }
  func.func @transform_4(%arg0: i32, %arg1: i32) -> (i32, i32, i32) {
    %c0_i32 = arith.constant 0 : i32
    %c0_i32_0 = arith.constant 0 : i32
    return %arg1, %arg0, %c0_i32 : i32, i32, i32
  }
  func.func @transform_5(%arg0: i32, %arg1: i32) -> (i32, i32) {
    %c0_i32 = arith.constant 0 : i32
    %c0_i32_0 = arith.constant 0 : i32
    return %arg0, %c0_i32 : i32, i32
  }
}

</mosaic_0001>

<bundles_post_ra>
// kernel: gru_decoder_forward.1
= control target key start
LH: loop header
LB: loop body
LE: loop exit
PB: predicated region body
PF: predicated region fallthrough
CT: control target
= control target key end

     0   :  { %v2239_v1 = vmov 0.0   ;;  %v2240_v2 = vmov 0   ;;  %vm2241_vm0 = vmmov 0   ;;  %s2826_s2 = inlined_call_operand.vmem [shape: bf16[128,384], index: 2, kind: input, shape index: {}]   ;;  %s2827_s1 = inlined_call_operand.vmem [shape: f32[8,128], index: 1, kind: input, shape index: {}]   ;;  %s2828_s0 = inlined_call_operand.vmem [shape: bf16[6,8,384], index: 0, kind: input, shape index: {}]   ;;  %s2829_s3 = inlined_call_operand.vmem [shape: f32[1,128], index: 3, kind: input, shape index: {}]   ;;  %s2830_s4 = inlined_call_operand.vmem [shape: bf16[6,8,128], index: 4, kind: output, shape index: {0}]   ;;  %s2831_s5 = inlined_call_operand.vmem [shape: f32[8,128], index: 5, kind: output, shape index: {1}]  }
   0x1   :  { %v2275_v0 = vld [vmem:[%s2826_s2 + $0xac] ss:$12 sps:$4 sm:$0xff]   ;;  %1960 = vmatprep.subr.bf16.mxu1 %v2239_v1  ;;  %220 = vmatprep.mubr.bf16.mxu0 %v2240_v2  ;;  %v2282_v3 = vld [vmem:[%s2826_s2 + $0xa8] ss:$12 sps:$4 sm:$0xff]   ;;  %v54_v5 = vld [vmem:[%s2826_s2 + $0x9c] sm:$0xff] }
   0x2   :  { %v52_v4 = vld [vmem:[%s2826_s2 + $0x90] sm:$0xff]  ;;  %1976 = vmatprep.mubr.msk.bf16.mxu1 %vm2241_vm0, %v2239_v1  ;;  %188 = vmatprep.subr.bf16.mxu0 %v2275_v0  ;;  %v2302_v8 = vld [vmem:[%s2826_s2 + $0x7c] ss:$12 sps:$4 sm:$0xff]   ;;  %v2308_v9 = vld [vmem:[%s2826_s2 + $0x78] ss:$12 sps:$4 sm:$0xff]  }
   0x3   :  { %v2293_v6 = vcombine.high %v52_v4, %v54_v5  ;;  %189 = vmatpush1.bf16.msra.mxu0 %v2282_v3  ;;  %v2296_v7 = vcombine.low %v52_v4, %v54_v5  ;;  %v2314_v10 = vld [vmem:[%s2826_s2 + $0x64] ss:$12 sps:$4 sm:$0xff]   ;;  %v2322_v12 = vld [vmem:[%s2826_s2 + $0x60] ss:$12 sps:$4 sm:$0xff]   ;;  %v2338_v15 = vld [vmem:[%s2826_s2 + $0x48] ss:$12 sps:$4 sm:$0xff]  }
   0x4   :  { %v2103_v11 = vld [vmem:[%s2826_s2 + $0xb0] ss:$12 sps:$4 sm:$0xff]   ;;  %v2107_v13 = vld [vmem:[%s2826_s2 + $0x98] ss:$12 sps:$4 sm:$0xff]   ;;  %v2108_v16 = vld [vmem:[%s2826_s2 + $0x80] ss:$12 sps:$4 sm:$0xff]  }
   0x5   :  { %190 = vmatprep.subr.bf16.mxu0 %v2293_v6  ;;  %1961 = vmatpush3.bf16.msra.mxu1 %v2103_v11  ;;  %v2332_v14 = vld [vmem:[%s2826_s2 + $0x4c] ss:$12 sps:$4 sm:$0xff]   ;;  %v2348_v17 = vld [vmem:[%s2826_s2 + $0x34] ss:$12 sps:$4 sm:$0xff]   ;;  %v2354_v18 = vld [vmem:[%s2826_s2 + $0x30] ss:$12 sps:$4 sm:$0xff]  }
   0x6   :  { %1962 = vmatprep.subr.bf16.mxu1 %v2239_v1  ;;  %v2359_v19 = vld [vmem:[%s2826_s2 + $0x1c] ss:$12 sps:$4 sm:$0xff]   ;;  %v2370_v21 = vld [vmem:[%s2826_s2 + $0x18] ss:$12 sps:$4 sm:$0xff]   ;;  %v2386_v24 = vld [vmem:[%s2826_s2] ss:$12 sps:$4 sm:$0xff]  }
   0x7   :  { %191 = vmatpush1.bf16.msra.mxu0 %v2296_v7  ;;  %v2109_v20 = vld [vmem:[%s2826_s2 + $0x68] ss:$12 sps:$4 sm:$0xff]   ;;  %v2110_v22 = vld [vmem:[%s2826_s2 + $0x50] ss:$12 sps:$4 sm:$0xff]   ;;  %v2391_v25 = vld [vmem:[%s2827_s1] sm:$0xff] }
   0x8   :  { %192 = vmatprep.subr.bf16.mxu0 %v2302_v8  ;;  %v2378_v23 = vld [vmem:[%s2826_s2 + $0x4] ss:$12 sps:$4 sm:$0xff]   ;;  %v2112_v27 = vld [vmem:[%s2826_s2 + $0x20] ss:$12 sps:$4 sm:$0xff]   ;;  %v27_v28 = vpack.c.bf16 %v2391_v25, %v2391_v25  ;;  %v2113_v29 = vld [vmem:[%s2826_s2 + $0x8] ss:$12 sps:$4 sm:$0xff]  }
   0x9   :  { %1963 = vmatpush3.bf16.msra.mxu1 %v2107_v13  ;;  %v2111_v26 = vld [vmem:[%s2826_s2 + $0x38] ss:$12 sps:$4 sm:$0xff]   ;;  %v2114_v30 = vld [vmem:[%s2826_s2 + $0xb0] ss:$12 sps:$4 sm:$0xff]   ;;  %v2116_v32 = vld [vmem:[%s2826_s2 + $0x80] ss:$12 sps:$4 sm:$0xff]  }
   0xa   :  { %1964 = vmatprep.subr.bf16.mxu1 %v2239_v1  ;;  %v2115_v31 = vld [vmem:[%s2826_s2 + $0x98] ss:$12 sps:$4 sm:$0xff]   ;;  %v2117_v33 = vld [vmem:[%s2826_s2 + $0x68] ss:$12 sps:$4 sm:$0xff]   ;;  %v2118_v34 = vld [vmem:[%s2826_s2 + $0x50] ss:$12 sps:$4 sm:$0xff]  }
   0xb   :  { %193 = vmatpush1.bf16.msra.mxu0 %v2308_v9  ;;  %v2119_v35 = vld [vmem:[%s2826_s2 + $0x38] ss:$12 sps:$4 sm:$0xff]   ;;  %v2120_v36 = vld [vmem:[%s2826_s2 + $0x20] ss:$12 sps:$4 sm:$0xff]   ;;  %v2121_v37 = vld [vmem:[%s2826_s2 + $0x8] ss:$12 sps:$4 sm:$0xff]  }
   0xc   :  { %194 = vmatprep.subr.bf16.mxu0 %v2314_v10  ;;  %v269_v38 = vld [vmem:[%s2828_s0] sm:$0xff]  ;;  %v270_v57 = vld [vmem:[%s2828_s0 + $0x8] sm:$0xf] }
   0xd   :  { %1965 = vmatpush3.bf16.msra.mxu1 %v2108_v16  ;;  %v271_v39 = vunpack.c.l.bf16 %v269_v38  ;;  %v272_v44 = vunpack.c.h.bf16 %v269_v38  ;;  %v2469_v56 = vld [vmem:[%s2829_s3] ss:$0 sm:$0xff]  ;;  %v273_v60 = vunpack.c.l.bf16 %v270_v57 }
   0xe   :  { %1966 = vmatprep.subr.bf16.mxu1 %v2239_v1 }
   0xf   :  { %195 = vmatpush1.bf16.msra.mxu0 %v2322_v12 }
  0x10   :  { %196 = vmatprep.subr.bf16.mxu0 %v2332_v14 }
  0x11   :  { %1967 = vmatpush3.bf16.msra.mxu1 %v2109_v20 }
  0x12   :  { %1968 = vmatprep.subr.bf16.mxu1 %v2239_v1 }
  0x13   :  { %197 = vmatpush1.bf16.msra.mxu0 %v2338_v15 }
  0x14   :  { %198 = vmatprep.subr.bf16.mxu0 %v2348_v17 }
  0x15   :  { %1969 = vmatpush3.bf16.msra.mxu1 %v2110_v22 }
  0x16   :  { %1970 = vmatprep.subr.bf16.mxu1 %v2239_v1 }
  0x17   :  { %199 = vmatpush1.bf16.msra.mxu0 %v2354_v18 }
  0x18   :  { %200 = vmatprep.subr.bf16.mxu0 %v2359_v19 }
  0x19   :  { %1971 = vmatpush3.bf16.msra.mxu1 %v2111_v26  ;;  %v2123_v26 = vld [vmem:[%s2826_s2 + $0x98] ss:$12 sps:$4 sm:$0xff]  }
  0x1a   :  { %1972 = vmatprep.subr.bf16.mxu1 %v2239_v1 }
  0x1b   :  { %201 = vmatpush1.bf16.msra.mxu0 %v2370_v21 }
  0x1c   :  { %202 = vmatprep.subr.bf16.mxu0 %v2378_v23 }
  0x1d   :  { %1973 = vmatpush3.bf16.msra.mxu1 %v2112_v27  ;;  %v2124_v27 = vld [vmem:[%s2826_s2 + $0x80] ss:$12 sps:$4 sm:$0xff]  }
  0x1e   :  { %1974 = vmatprep.subr.bf16.mxu1 %v2239_v1 }
  0x1f   :  { %203 = vmatpush1.bf16.msra.mxu0 %v2386_v24 }
  0x20   :  { %468 = vmatprep.subr.bf16.mxu0 %v2275_v0 }
  0x21   :  { %1975 = vmatpush3.bf16.msra.mxu1 %v2113_v29  ;;  %v2126_v29 = vld [vmem:[%s2826_s2 + $0x50] ss:$12 sps:$4 sm:$0xff]  }
  0x22   :  { %221 = vmatmul.mubr.bf16.vlgmr.msra.gmra.mxu0 %v27_v28  ;;  %1980 = vmatprep.subr.bf16.mxu1 %v2239_v1 }
  0x23   :  { %469 = vmatpush1.bf16.msra.mxu0 %v2282_v3  ;;  %500 = vmatprep.mubr.bf16.mxu0 %v2240_v2 }
  0x24   :  { %470 = vmatprep.subr.bf16.mxu0 %v2293_v6  ;;  %1977 = vmatmul.mubr.bf16.vlgmr.msra.gmra.mxu1 %v27_v28  ;;  %v2125_v28 = vld [vmem:[%s2826_s2 + $0x68] ss:$12 sps:$4 sm:$0xff]  }
  0x25   :  { %1996 = vmatprep.mubr.msk.bf16.mxu1 %vm2241_vm0, %v2239_v1  ;;  %1981 = vmatpush3.bf16.msra.mxu1 %v2114_v30  ;;  %v2127_v30 = vld [vmem:[%s2826_s2 + $0x38] ss:$12 sps:$4 sm:$0xff]  }
  0x26   :  { %1982 = vmatprep.subr.bf16.mxu1 %v2239_v1 }
  0x27   :  { %471 = vmatpush1.bf16.msra.mxu0 %v2296_v7 }
  0x28   :  { %472 = vmatprep.subr.bf16.mxu0 %v2302_v8 }
  0x29   :  { %1983 = vmatpush3.bf16.msra.mxu1 %v2115_v31  ;;  %v2128_v31 = vld [vmem:[%s2826_s2 + $0x20] ss:$12 sps:$4 sm:$0xff]  }
  0x2a   :  { %1984 = vmatprep.subr.bf16.mxu1 %v2239_v1 }
  0x2b   :  { %473 = vmatpush1.bf16.msra.mxu0 %v2308_v9 }
  0x2c   :  { %474 = vmatprep.subr.bf16.mxu0 %v2314_v10 }
  0x2d   :  { %1985 = vmatpush3.bf16.msra.mxu1 %v2116_v32  ;;  %v2129_v32 = vld [vmem:[%s2826_s2 + $0x8] ss:$12 sps:$4 sm:$0xff]  }
  0x2e   :  { %1986 = vmatprep.subr.bf16.mxu1 %v2239_v1 }
  0x2f   :  { %475 = vmatpush1.bf16.msra.mxu0 %v2322_v12 }
  0x30   :  { %476 = vmatprep.subr.bf16.mxu0 %v2332_v14 }
  0x31   :  { %1987 = vmatpush3.bf16.msra.mxu1 %v2117_v33  ;;  %v1780_v33 = vld [vmem:[%s2828_s0 + $0xc] sm:$0xff] }
  0x32   :  { %1988 = vmatprep.subr.bf16.mxu1 %v2239_v1 }
  0x33   :  { %477 = vmatpush1.bf16.msra.mxu0 %v2338_v15 }
  0x34   :  { %478 = vmatprep.subr.bf16.mxu0 %v2348_v17 }
  0x35   :  { %1989 = vmatpush3.bf16.msra.mxu1 %v2118_v34  ;;  %v552_v34 = vunpack.c.l.bf16 %v1780_v33 }
  0x36   :  { %1990 = vmatprep.subr.bf16.mxu1 %v2239_v1 }
  0x37   :  { %479 = vmatpush1.bf16.msra.mxu0 %v2354_v18 }
  0x38   :  { %480 = vmatprep.subr.bf16.mxu0 %v2359_v19 }
  0x39   :  { %1991 = vmatpush3.bf16.msra.mxu1 %v2119_v35 }
  0x3a   :  { %1992 = vmatprep.subr.bf16.mxu1 %v2239_v1 }
  0x3b   :  { %481 = vmatpush1.bf16.msra.mxu0 %v2370_v21 }
  0x3c   :  { %482 = vmatprep.subr.bf16.mxu0 %v2378_v23 }
  0x3d   :  { %1993 = vmatpush3.bf16.msra.mxu1 %v2120_v36 }
  0x3e   :  { %1994 = vmatprep.subr.bf16.mxu1 %v2239_v1 }
  0x3f   :  { %483 = vmatpush1.bf16.msra.mxu0 %v2386_v24 }
  0x40   :  { %750 = vmatprep.subr.bf16.mxu0 %v2275_v0 }
  0x41   :  { %1995 = vmatpush3.bf16.msra.mxu1 %v2121_v37 }
  0x42   :  { %2000 = vmatprep.subr.bf16.mxu1 %v2239_v1 }
  0xe2   :  { %v222_v40 = vpop.f32.mrf.mxu0 }
  0xe3   :  { %v274_v41 = vadd.f32 %v271_v39, %v222_v40 }
  0xe4   :  { %v224_v42 = vpop.f32.mrf.mxu0  ;;  %v263_v48 = vpop.f32.mrf.mxu1 }
  0xe5   :  { %v1753_v43 = vmul.f32 -1.442695, %v274_v41  ;;  %v281_v47 = vadd.f32 %v272_v44, %v224_v42  ;;  %v295_v59 = vadd.f32 %v2469_v56, %v263_v48  ;;  %v553_v41 = vunpack.c.h.bf16 %v1780_v33 }
  0xe6   :  { %v226_v45 = vpop.f32.mrf.mxu0  ;;  %v1978_v49 = vpop.f32.mrf.mxu1 }
  0xe7   :  { %2179 = vpow2.f32 %v1753_v43  ;;  %v1754_v50 = vmul.f32 -1.442695, %v281_v47 }
  0xe8   :  { %v227_v46 = vpop.f32.mrf.mxu0  ;;  %v266_v51 = vpop.f32.mrf.mxu1 }
  0xe9   :  { %2181 = vpow2.f32 %v1754_v50  ;;  %v2540_v51 = vld [vmem:[%s2828_s0 + $0x14] ss:$12 sps:$4 sm:$0xff]  }
  0xea   :  { %v1979_v52 = vpop.f32.mrf.mxu1 }
  0xf4   :  { %v2180_v53 = vpop.eup %2179 }
  0xf5   :  { %v278_v54 = vadd.f32 1.0, %v2180_v53  ;;  %v554_v53 = vunpack.c.l.bf16 %v2540_v51 }
  0xf6   :  { %v2182_v55 = vpop.eup %2181 }
  0xf7   :  { %2183 = vrcp.f32 %v278_v54  ;;  %v285_v58 = vadd.f32 1.0, %v2182_v55 }
  0xf9   :  { %2185 = vrcp.f32 %v285_v58 }
 0x104   :  { %v2184_v61 = vpop.eup %2183 }
 0x105   :  { %v296_v62 = vmul.f32 %v2184_v61, %v295_v59 }
 0x106   :  { %v2186_v4 = vpop.eup %2185 }
 0x107   :  { %v297_v63 = vadd.f32 %v296_v62, %v273_v60  ;;  %v299_v5 = vsub.f32 1.0, %v2186_v4  ;;  %v301_v16 = vmul.f32 %v2186_v4, %v2391_v25  ;;  %v2122_v25 = vld [vmem:[%s2826_s2 + $0xb0] ss:$12 sps:$4 sm:$0xff]  }
 0x109   :  { %2187 = vtanh.f32 %v297_v63 }
 0x116   :  { %v2188_v11 = vpop.eup %2187 }
 0x117   :  { %v300_v13 = vmul.f32 %v2188_v11, %v299_v5 }
 0x119   :  { %v2476_v20 = vadd.f32 %v301_v16, %v300_v13 }
 0x11b   :  { %v304_v22 = vpack.c.bf16 %v2476_v20, %v2476_v20 }
 0x11d   :  { %305 = vst [vmem:[%s2830_s4] sm:$0xf] %v304_v22  ;;  %501 = vmatmul.mubr.bf16.vlgmr.msra.gmra.mxu0 %v304_v22  ;;  %1997 = vmatmul.mubr.bf16.vlgmr.msra.gmra.mxu1 %v304_v22 }
 0x11e   :  { %751 = vmatpush1.bf16.msra.mxu0 %v2282_v3  ;;  %782 = vmatprep.mubr.bf16.mxu0 %v2240_v2 }
 0x11f   :  { %752 = vmatprep.subr.bf16.mxu0 %v2293_v6  ;;  %2016 = vmatprep.mubr.msk.bf16.mxu1 %vm2241_vm0, %v2239_v1 }
 0x120   :  { %2001 = vmatpush3.bf16.msra.mxu1 %v2122_v25 }
 0x121   :  { %2002 = vmatprep.subr.bf16.mxu1 %v2239_v1 }
 0x122   :  { %753 = vmatpush1.bf16.msra.mxu0 %v2296_v7 }
 0x123   :  { %754 = vmatprep.subr.bf16.mxu0 %v2302_v8 }
 0x124   :  { %2003 = vmatpush3.bf16.msra.mxu1 %v2123_v26 }
 0x125   :  { %2004 = vmatprep.subr.bf16.mxu1 %v2239_v1 }
 0x126   :  { %755 = vmatpush1.bf16.msra.mxu0 %v2308_v9 }
 0x127   :  { %756 = vmatprep.subr.bf16.mxu0 %v2314_v10 }
 0x128   :  { %2005 = vmatpush3.bf16.msra.mxu1 %v2124_v27 }
 0x129   :  { %2006 = vmatprep.subr.bf16.mxu1 %v2239_v1 }
 0x12a   :  { %757 = vmatpush1.bf16.msra.mxu0 %v2322_v12 }
 0x12b   :  { %758 = vmatprep.subr.bf16.mxu0 %v2332_v14 }
 0x12c   :  { %2007 = vmatpush3.bf16.msra.mxu1 %v2125_v28 }
 0x12d   :  { %2008 = vmatprep.subr.bf16.mxu1 %v2239_v1 }
 0x12e   :  { %759 = vmatpush1.bf16.msra.mxu0 %v2338_v15 }
 0x12f   :  { %760 = vmatprep.subr.bf16.mxu0 %v2348_v17 }
 0x130   :  { %2009 = vmatpush3.bf16.msra.mxu1 %v2126_v29 }
 0x131   :  { %2010 = vmatprep.subr.bf16.mxu1 %v2239_v1 }
 0x132   :  { %761 = vmatpush1.bf16.msra.mxu0 %v2354_v18 }
 0x133   :  { %762 = vmatprep.subr.bf16.mxu0 %v2359_v19 }
 0x134   :  { %2011 = vmatpush3.bf16.msra.mxu1 %v2127_v30 }
 0x135   :  { %2012 = vmatprep.subr.bf16.mxu1 %v2239_v1 }
 0x136   :  { %763 = vmatpush1.bf16.msra.mxu0 %v2370_v21 }
 0x137   :  { %764 = vmatprep.subr.bf16.mxu0 %v2378_v23 }
 0x138   :  { %2013 = vmatpush3.bf16.msra.mxu1 %v2128_v31 }
 0x139   :  { %2014 = vmatprep.subr.bf16.mxu1 %v2239_v1 }
 0x13a   :  { %765 = vmatpush1.bf16.msra.mxu0 %v2386_v24 }
 0x13b   :  { %1032 = vmatprep.subr.bf16.mxu0 %v2275_v0 }
 0x13c   :  { %2015 = vmatpush3.bf16.msra.mxu1 %v2129_v32 }
 0x13d   :  { %2020 = vmatprep.subr.bf16.mxu1 %v2239_v1 }
 0x1dd   :  { %v502_v35 = vpop.f32.mrf.mxu0  ;;  %v543_v36 = vpop.f32.mrf.mxu1 }
 0x1de   :  { %v555_v37 = vadd.f32 %v552_v34, %v502_v35  ;;  %v576_v54 = vadd.f32 %v2469_v56, %v543_v36  ;;  %v836_v34 = vunpack.c.h.bf16 %v2540_v51  ;;  %v2663_v51 = vld [vmem:[%s2826_s2 + $0x4c] ss:$12 sps:$4 sm:$0xff]  }
 0x1df   :  { %v504_v38 = vpop.f32.mrf.mxu0  ;;  %v1998_v39 = vpop.f32.mrf.mxu1 }
 0x1e0   :  { %v1782_v40 = vmul.f32 -1.442695, %v555_v37  ;;  %v562_v46 = vadd.f32 %v553_v41, %v504_v38 }
 0x1e1   :  { %v506_v42 = vpop.f32.mrf.mxu0  ;;  %v546_v43 = vpop.f32.mrf.mxu1 }
 0x1e2   :  { %2189 = vpow2.f32 %v1782_v40  ;;  %v1783_v47 = vmul.f32 -1.442695, %v562_v46  ;;  %v2138_v46 = vld [vmem:[%s2826_s2 + $0xb0] ss:$12 sps:$4 sm:$0xff]  }
 0x1e3   :  { %v507_v44 = vpop.f32.mrf.mxu0  ;;  %v1999_v45 = vpop.f32.mrf.mxu1 }
 0x1e4   :  { %2191 = vpow2.f32 %v1783_v47  ;;  %v2140_v47 = vld [vmem:[%s2826_s2 + $0x98] ss:$12 sps:$4 sm:$0xff]  }
 0x1ef   :  { %v2190_v48 = vpop.eup %2189 }
 0x1f0   :  { %v559_v49 = vadd.f32 1.0, %v2190_v48  ;;  %v2638_v48 = vld [vmem:[%s2826_s2 + $0x78] ss:$12 sps:$4 sm:$0xff]  }
 0x1f1   :  { %v2192_v50 = vpop.eup %2191 }
 0x1f2   :  { %2193 = vrcp.f32 %v559_v49  ;;  %v566_v52 = vadd.f32 1.0, %v2192_v50  ;;  %v2144_v49 = vld [vmem:[%s2826_s2 + $0x80] ss:$12 sps:$4 sm:$0xff]   ;;  %v2148_v50 = vld [vmem:[%s2826_s2 + $0x68] ss:$12 sps:$4 sm:$0xff]  }
 0x1f4   :  { %2195 = vrcp.f32 %v566_v52  ;;  %v2669_v52 = vld [vmem:[%s2826_s2 + $0x48] ss:$12 sps:$4 sm:$0xff]  }
 0x1ff   :  { %v2194_v55 = vpop.eup %2193 }
 0x200   :  { %v577_v57 = vmul.f32 %v2194_v55, %v576_v54  ;;  %v2679_v54 = vld [vmem:[%s2826_s2 + $0x34] ss:$12 sps:$4 sm:$0xff]   ;;  %v2685_v55 = vld [vmem:[%s2826_s2 + $0x30] ss:$12 sps:$4 sm:$0xff]  }
 0x201   :  { %v2196_v59 = vpop.eup %2195 }
 0x202   :  { %v578_v58 = vadd.f32 %v577_v57, %v554_v53  ;;  %v580_v60 = vsub.f32 1.0, %v2196_v59  ;;  %v582_v63 = vmul.f32 %v2196_v59, %v2476_v20  ;;  %v2152_v53 = vld [vmem:[%s2826_s2 + $0x50] ss:$12 sps:$4 sm:$0xff]   ;;  %v2156_v57 = vld [vmem:[%s2826_s2 + $0x38] ss:$12 sps:$4 sm:$0xff]  }
 0x203   :  { %v2701_v59 = vld [vmem:[%s2826_s2 + $0x18] ss:$12 sps:$4 sm:$0xff]  }
 0x204   :  { %2197 = vtanh.f32 %v578_v58  ;;  %v2695_v58 = vld [vmem:[%s2826_s2 + $0x1c] ss:$12 sps:$4 sm:$0xff]  }
 0x211   :  { %v2198_v61 = vpop.eup %2197 }
 0x212   :  { %v581_v62 = vmul.f32 %v2198_v61, %v580_v60  ;;  %v2160_v60 = vld [vmem:[%s2826_s2 + $0x20] ss:$12 sps:$4 sm:$0xff]   ;;  %v2711_v61 = vld [vmem:[%s2826_s2 + $0x4] ss:$12 sps:$4 sm:$0xff]  }
 0x214   :  { %v2545_v4 = vadd.f32 %v582_v63, %v581_v62  ;;  %v2717_v62 = vld [vmem:[%s2826_s2] ss:$12 sps:$4 sm:$0xff]   ;;  %v2164_v63 = vld [vmem:[%s2826_s2 + $0x8] ss:$12 sps:$4 sm:$0xff]  }
 0x216   :  { %v585_v5 = vpack.c.bf16 %v2545_v4, %v2545_v4 }
 0x218   :  { %1785 = vst [vmem:[%s2830_s4 + $0x4] sm:$0xf] %v585_v5  ;;  %783 = vmatmul.mubr.bf16.vlgmr.msra.gmra.mxu0 %v585_v5  ;;  %2017 = vmatmul.mubr.bf16.vlgmr.msra.gmra.mxu1 %v585_v5 }
 0x219   :  { %1033 = vmatpush1.bf16.msra.mxu0 %v2282_v3  ;;  %1064 = vmatprep.mubr.bf16.mxu0 %v2240_v2 }
 0x21a   :  { %1034 = vmatprep.subr.bf16.mxu0 %v2293_v6  ;;  %2036 = vmatprep.mubr.msk.bf16.mxu1 %vm2241_vm0, %v2239_v1 }
 0x21d   :  { %1035 = vmatpush1.bf16.msra.mxu0 %v2296_v7 }
 0x21e   :  { %1036 = vmatprep.subr.bf16.mxu0 %v2302_v8  ;;  %v2130_v8 = vld [vmem:[%s2826_s2 + $0xb0] ss:$12 sps:$4 sm:$0xff]  }
 0x21f   :  { %2021 = vmatpush3.bf16.msra.mxu1 %v2130_v8 }
 0x220   :  { %2022 = vmatprep.subr.bf16.mxu1 %v2239_v1 }
 0x221   :  { %1037 = vmatpush1.bf16.msra.mxu0 %v2308_v9  ;;  %v2131_v9 = vld [vmem:[%s2826_s2 + $0x98] ss:$12 sps:$4 sm:$0xff]  }
 0x222   :  { %1038 = vmatprep.subr.bf16.mxu0 %v2314_v10  ;;  %v2132_v10 = vld [vmem:[%s2826_s2 + $0x80] ss:$12 sps:$4 sm:$0xff]  }
 0x223   :  { %2023 = vmatpush3.bf16.msra.mxu1 %v2131_v9 }
 0x224   :  { %2024 = vmatprep.subr.bf16.mxu1 %v2239_v1 }
 0x225   :  { %1039 = vmatpush1.bf16.msra.mxu0 %v2322_v12  ;;  %v2134_v12 = vld [vmem:[%s2826_s2 + $0x50] ss:$12 sps:$4 sm:$0xff]  }
 0x226   :  { %1040 = vmatprep.subr.bf16.mxu0 %v2332_v14  ;;  %v2135_v14 = vld [vmem:[%s2826_s2 + $0x38] ss:$12 sps:$4 sm:$0xff]  }
 0x227   :  { %2025 = vmatpush3.bf16.msra.mxu1 %v2132_v10 }
 0x228   :  { %2026 = vmatprep.subr.bf16.mxu1 %v2239_v1 }
 0x229   :  { %1041 = vmatpush1.bf16.msra.mxu0 %v2338_v15  ;;  %v2136_v15 = vld [vmem:[%s2826_s2 + $0x20] ss:$12 sps:$4 sm:$0xff]  }
 0x22a   :  { %1042 = vmatprep.subr.bf16.mxu0 %v2348_v17  ;;  %v2137_v17 = vld [vmem:[%s2826_s2 + $0x8] ss:$12 sps:$4 sm:$0xff]  }
 0x22d   :  { %1043 = vmatpush1.bf16.msra.mxu0 %v2354_v18  ;;  %v1810_v18 = vld [vmem:[%s2828_s0 + $0x18] sm:$0xff] }
 0x22e   :  { %1044 = vmatprep.subr.bf16.mxu0 %v2359_v19  ;;  %v834_v19 = vunpack.c.l.bf16 %v1810_v18  ;;  %v835_v20 = vunpack.c.h.bf16 %v1810_v18 }
 0x231   :  { %1045 = vmatpush1.bf16.msra.mxu0 %v2370_v21 }
 0x232   :  { %1046 = vmatprep.subr.bf16.mxu0 %v2378_v23 }
 0x235   :  { %1047 = vmatpush1.bf16.msra.mxu0 %v2386_v24 }
 0x236   :  { %1314 = vmatprep.subr.bf16.mxu0 %v2275_v0  ;;  %v2133_v0 = vld [vmem:[%s2826_s2 + $0x68] ss:$12 sps:$4 sm:$0xff]  }
 0x237   :  { %2027 = vmatpush3.bf16.msra.mxu1 %v2133_v0 }
 0x238   :  { %2028 = vmatprep.subr.bf16.mxu1 %v2239_v1 }
 0x23b   :  { %2029 = vmatpush3.bf16.msra.mxu1 %v2134_v12 }
 0x23c   :  { %2030 = vmatprep.subr.bf16.mxu1 %v2239_v1 }
 0x23f   :  { %2031 = vmatpush3.bf16.msra.mxu1 %v2135_v14 }
 0x240   :  { %2032 = vmatprep.subr.bf16.mxu1 %v2239_v1 }
 0x243   :  { %2033 = vmatpush3.bf16.msra.mxu1 %v2136_v15 }
 0x244   :  { %2034 = vmatprep.subr.bf16.mxu1 %v2239_v1 }
 0x247   :  { %2035 = vmatpush3.bf16.msra.mxu1 %v2137_v17 }
 0x248   :  { %2040 = vmatprep.subr.bf16.mxu1 %v2239_v1 }
 0x2d8   :  { %v784_v21 = vpop.f32.mrf.mxu0  ;;  %v825_v23 = vpop.f32.mrf.mxu1 }
 0x2d9   :  { %v837_v24 = vadd.f32 %v834_v19, %v784_v21  ;;  %v858_v35 = vadd.f32 %v2469_v56, %v825_v23 }
 0x2da   :  { %v786_v11 = vpop.f32.mrf.mxu0  ;;  %v2018_v13 = vpop.f32.mrf.mxu1 }
 0x2db   :  { %v1812_v16 = vmul.f32 -1.442695, %v837_v24  ;;  %v844_v28 = vadd.f32 %v835_v20, %v786_v11  ;;  %v2732_v20 = vld [vmem:[%s2828_s0 + $0x2c] ss:$12 sps:$4 sm:$0xff]  }
 0x2dc   :  { %v788_v22 = vpop.f32.mrf.mxu0  ;;  %v828_v25 = vpop.f32.mrf.mxu1 }
 0x2dd   :  { %2199 = vpow2.f32 %v1812_v16  ;;  %v1813_v29 = vmul.f32 -1.442695, %v844_v28  ;;  %v1118_v25 = vunpack.c.l.bf16 %v2732_v20 }
 0x2de   :  { %v789_v26 = vpop.f32.mrf.mxu0  ;;  %v2019_v27 = vpop.f32.mrf.mxu1 }
 0x2df   :  { %2201 = vpow2.f32 %v1813_v29 }
 0x2ea   :  { %v2200_v30 = vpop.eup %2199 }
 0x2eb   :  { %v841_v31 = vadd.f32 1.0, %v2200_v30 }
 0x2ec   :  { %v2202_v32 = vpop.eup %2201 }
 0x2ed   :  { %2203 = vrcp.f32 %v841_v31  ;;  %v848_v33 = vadd.f32 1.0, %v2202_v32 }
 0x2ef   :  { %2205 = vrcp.f32 %v848_v33 }
 0x2fa   :  { %v2204_v36 = vpop.eup %2203 }
 0x2fb   :  { %v859_v37 = vmul.f32 %v2204_v36, %v858_v35 }
 0x2fc   :  { %v2206_v39 = vpop.eup %2205 }
 0x2fd   :  { %v860_v38 = vadd.f32 %v859_v37, %v836_v34  ;;  %v862_v40 = vsub.f32 1.0, %v2206_v39  ;;  %v864_v43 = vmul.f32 %v2206_v39, %v2545_v4  ;;  %v1840_v4 = vld [vmem:[%s2828_s0 + $0x24] sm:$0xff]  ;;  %v2167_v37 = vld [vmem:[%s2826_s2 + $0xac] ss:$12 sps:$4 sm:$0xff]   ;;  %v2168_v39 = vld [vmem:[%s2826_s2 + $0xb0] ss:$12 sps:$4 sm:$0xff]  }
 0x2fe   :  { %v1116_v5 = vunpack.c.l.bf16 %v1840_v4  ;;  %v1117_v15 = vunpack.c.h.bf16 %v1840_v4  ;;  %v1400_v4 = vunpack.c.h.bf16 %v2732_v20 }
 0x2ff   :  { %2207 = vtanh.f32 %v860_v38  ;;  %v2165_v38 = vld [vmem:[%s2826_s2 + $0xa8] ss:$12 sps:$4 sm:$0xff]  }
 0x30c   :  { %v2208_v41 = vpop.eup %2207 }
 0x30d   :  { %v863_v42 = vmul.f32 %v2208_v41, %v862_v40  ;;  %v2169_v40 = vld [vmem:[%s2826_s2 + $0x90] ss:$12 sps:$4 sm:$0xff]   ;;  %v2172_v41 = vld [vmem:[%s2826_s2 + $0x98] ss:$12 sps:$4 sm:$0xff]  }
 0x30f   :  { %v2609_v44 = vadd.f32 %v864_v43, %v863_v42  ;;  %v2173_v42 = vld [vmem:[%s2826_s2 + $0x80] ss:$12 sps:$4 sm:$0xff]   ;;  %v2174_v43 = vld [vmem:[%s2826_s2 + $0x68] ss:$12 sps:$4 sm:$0xff]  }
 0x311   :  { %v867_v45 = vpack.c.bf16 %v2609_v44, %v2609_v44 }
 0x313   :  { %1815 = vst [vmem:[%s2830_s4 + $0x8] sm:$0xf] %v867_v45  ;;  %1065 = vmatmul.mubr.bf16.vlgmr.msra.gmra.mxu0 %v867_v45  ;;  %2037 = vmatmul.mubr.bf16.vlgmr.msra.gmra.mxu1 %v867_v45  ;;  %v2176_v45 = vld [vmem:[%s2826_s2 + $0x38] ss:$12 sps:$4 sm:$0xff]  }
 0x314   :  { %1315 = vmatpush1.bf16.msra.mxu0 %v2282_v3  ;;  %1346 = vmatprep.mubr.bf16.mxu0 %v2240_v2  ;;  %v2632_v3 = vld [vmem:[%s2826_s2 + $0x7c] ss:$12 sps:$4 sm:$0xff]  }
 0x315   :  { %2056 = vmatprep.mubr.msk.bf16.mxu1 %vm2241_vm0, %v2239_v1  ;;  %2041 = vmatpush3.bf16.msra.mxu1 %v2138_v46  ;;  %v2177_v46 = vld [vmem:[%s2826_s2 + $0x20] ss:$12 sps:$4 sm:$0xff]  }
 0x316   :  { %2042 = vmatprep.subr.bf16.mxu1 %v2239_v1  ;;  %1316 = vmatprep.subr.bf16.mxu0 %v2293_v6  ;;  %v2648_v6 = vld [vmem:[%s2826_s2 + $0x64] ss:$12 sps:$4 sm:$0xff]  }
 0x318   :  { %1317 = vmatpush1.bf16.msra.mxu0 %v2296_v7  ;;  %v2654_v7 = vld [vmem:[%s2826_s2 + $0x60] ss:$12 sps:$4 sm:$0xff]  }
 0x319   :  { %2043 = vmatpush3.bf16.msra.mxu1 %v2140_v47  ;;  %1318 = vmatprep.subr.bf16.mxu0 %v2632_v3  ;;  %v2178_v47 = vld [vmem:[%s2826_s2 + $0x8] ss:$12 sps:$4 sm:$0xff]  }
 0x31a   :  { %2044 = vmatprep.subr.bf16.mxu1 %v2239_v1 }
 0x31c   :  { %1319 = vmatpush1.bf16.msra.mxu0 %v2638_v48 }
 0x31d   :  { %2045 = vmatpush3.bf16.msra.mxu1 %v2144_v49  ;;  %1320 = vmatprep.subr.bf16.mxu0 %v2648_v6 }
 0x31e   :  { %2046 = vmatprep.subr.bf16.mxu1 %v2239_v1 }
 0x320   :  { %1321 = vmatpush1.bf16.msra.mxu0 %v2654_v7 }
 0x321   :  { %2047 = vmatpush3.bf16.msra.mxu1 %v2148_v50  ;;  %1322 = vmatprep.subr.bf16.mxu0 %v2663_v51 }
 0x322   :  { %2048 = vmatprep.subr.bf16.mxu1 %v2239_v1 }
 0x324   :  { %1323 = vmatpush1.bf16.msra.mxu0 %v2669_v52 }
 0x325   :  { %2049 = vmatpush3.bf16.msra.mxu1 %v2152_v53  ;;  %1324 = vmatprep.subr.bf16.mxu0 %v2679_v54 }
 0x326   :  { %2050 = vmatprep.subr.bf16.mxu1 %v2239_v1 }
 0x328   :  { %1325 = vmatpush1.bf16.msra.mxu0 %v2685_v55 }
 0x329   :  { %2051 = vmatpush3.bf16.msra.mxu1 %v2156_v57  ;;  %1326 = vmatprep.subr.bf16.mxu0 %v2695_v58 }
 0x32a   :  { %2052 = vmatprep.subr.bf16.mxu1 %v2239_v1 }
 0x32c   :  { %1327 = vmatpush1.bf16.msra.mxu0 %v2701_v59 }
 0x32d   :  { %2053 = vmatpush3.bf16.msra.mxu1 %v2160_v60  ;;  %1328 = vmatprep.subr.bf16.mxu0 %v2711_v61 }
 0x32e   :  { %2054 = vmatprep.subr.bf16.mxu1 %v2239_v1 }
 0x330   :  { %1329 = vmatpush1.bf16.msra.mxu0 %v2717_v62 }
 0x331   :  { %2055 = vmatpush3.bf16.msra.mxu1 %v2164_v63  ;;  %1596 = vmatprep.subr.bf16.mxu0 %v2167_v37 }
 0x332   :  { %2060 = vmatprep.subr.bf16.mxu1 %v2239_v1 }
 0x3d3   :  { %v1066_v8 = vpop.f32.mrf.mxu0  ;;  %v1107_v9 = vpop.f32.mrf.mxu1 }
 0x3d4   :  { %v1119_v10 = vadd.f32 %v1116_v5, %v1066_v8  ;;  %v1140_v26 = vadd.f32 %v2469_v56, %v1107_v9 }
 0x3d5   :  { %v1068_v0 = vpop.f32.mrf.mxu0  ;;  %v2038_v12 = vpop.f32.mrf.mxu1 }
 0x3d6   :  { %v1842_v14 = vmul.f32 -1.442695, %v1119_v10  ;;  %v1126_v23 = vadd.f32 %v1117_v15, %v1068_v0 }
 0x3d7   :  { %v1070_v17 = vpop.f32.mrf.mxu0  ;;  %v1110_v18 = vpop.f32.mrf.mxu1 }
 0x3d8   :  { %2209 = vpow2.f32 %v1842_v14  ;;  %v1843_v24 = vmul.f32 -1.442695, %v1126_v23 }
 0x3d9   :  { %v1071_v19 = vpop.f32.mrf.mxu0  ;;  %v2039_v21 = vpop.f32.mrf.mxu1 }
 0x3da   :  { %2211 = vpow2.f32 %v1843_v24 }
 0x3e5   :  { %v2210_v11 = vpop.eup %2209 }
 0x3e6   :  { %v1123_v13 = vadd.f32 1.0, %v2210_v11 }
 0x3e7   :  { %v2212_v16 = vpop.eup %2211 }
 0x3e8   :  { %2213 = vrcp.f32 %v1123_v13  ;;  %v1130_v22 = vadd.f32 1.0, %v2212_v16 }
 0x3ea   :  { %2215 = vrcp.f32 %v1130_v22 }
 0x3f5   :  { %v2214_v27 = vpop.eup %2213 }
 0x3f6   :  { %v1141_v28 = vmul.f32 %v2214_v27, %v1140_v26 }
 0x3f7   :  { %v2216_v30 = vpop.eup %2215 }
 0x3f8   :  { %v1142_v29 = vadd.f32 %v1141_v28, %v1118_v25  ;;  %v1144_v31 = vsub.f32 1.0, %v2216_v30  ;;  %v1146_v34 = vmul.f32 %v2216_v30, %v2609_v44  ;;  %v2175_v44 = vld [vmem:[%s2826_s2 + $0x50] ss:$12 sps:$4 sm:$0xff]  }
 0x3fa   :  { %2217 = vtanh.f32 %v1142_v29 }
 0x407   :  { %v2218_v32 = vpop.eup %2217 }
 0x408   :  { %v1145_v33 = vmul.f32 %v2218_v32, %v1144_v31 }
 0x40a   :  { %v2737_v35 = vadd.f32 %v1146_v34, %v1145_v33  ;;  %v1901_v34 = vld [vmem:[%s2828_s0 + $0x44] sm:$0xf] }
 0x40b   :  { %v1682_v37 = vunpack.c.l.bf16 %v1901_v34 }
 0x40c   :  { %v1149_v36 = vpack.c.bf16 %v2737_v35, %v2737_v35 }
 0x40e   :  { %1845 = vst [vmem:[%s2830_s4 + $0xc] sm:$0xf] %v1149_v36  ;;  %1347 = vmatmul.mubr.bf16.vlgmr.msra.gmra.mxu0 %v1149_v36  ;;  %2057 = vmatmul.mubr.bf16.vlgmr.msra.gmra.mxu1 %v1149_v36 }
 0x40f   :  { %1628 = vmatprep.mubr.bf16.mxu0 %v2240_v2  ;;  %2076 = vmatprep.mubr.msk.bf16.mxu1 %vm2241_vm0, %v2239_v1  ;;  %v2171_v2 = vld [vmem:[%s2826_s2 + $0x94] ss:$12 sps:$4 sm:$0xff]  }
 0x410   :  { %1597 = vmatpush1.bf16.msra.mxu0 %v2165_v38  ;;  %2061 = vmatpush3.bf16.msra.mxu1 %v2168_v39 }
 0x411   :  { %2062 = vmatprep.subr.bf16.mxu1 %v2239_v1  ;;  %1598 = vmatprep.subr.bf16.mxu0 %v2171_v2 }
 0x414   :  { %1599 = vmatpush1.bf16.msra.mxu0 %v2169_v40  ;;  %2063 = vmatpush3.bf16.msra.mxu1 %v2172_v41 }
 0x415   :  { %1600 = vmatprep.subr.bf16.mxu0 %v2632_v3  ;;  %2064 = vmatprep.subr.bf16.mxu1 %v2239_v1  ;;  %v1870_v3 = vld [vmem:[%s2828_s0 + $0x30] sm:$0xff] }
 0x416   :  { %v1399_v53 = vunpack.c.h.bf16 %v1870_v3 }
 0x418   :  { %1601 = vmatpush1.bf16.msra.mxu0 %v2638_v48  ;;  %2065 = vmatpush3.bf16.msra.mxu1 %v2173_v42  ;;  %v1398_v48 = vunpack.c.l.bf16 %v1870_v3 }
 0x419   :  { %1602 = vmatprep.subr.bf16.mxu0 %v2648_v6  ;;  %2066 = vmatprep.subr.bf16.mxu1 %v2239_v1 }
 0x41c   :  { %1603 = vmatpush1.bf16.msra.mxu0 %v2654_v7  ;;  %2067 = vmatpush3.bf16.msra.mxu1 %v2174_v43 }
 0x41d   :  { %1604 = vmatprep.subr.bf16.mxu0 %v2663_v51  ;;  %2068 = vmatprep.subr.bf16.mxu1 %v2239_v1 }
 0x420   :  { %1605 = vmatpush1.bf16.msra.mxu0 %v2669_v52  ;;  %2069 = vmatpush3.bf16.msra.mxu1 %v2175_v44 }
 0x421   :  { %1606 = vmatprep.subr.bf16.mxu0 %v2679_v54  ;;  %2070 = vmatprep.subr.bf16.mxu1 %v2239_v1 }
 0x424   :  { %1607 = vmatpush1.bf16.msra.mxu0 %v2685_v55  ;;  %2071 = vmatpush3.bf16.msra.mxu1 %v2176_v45 }
 0x425   :  { %1608 = vmatprep.subr.bf16.mxu0 %v2695_v58  ;;  %2072 = vmatprep.subr.bf16.mxu1 %v2239_v1 }
 0x428   :  { %1609 = vmatpush1.bf16.msra.mxu0 %v2701_v59  ;;  %2073 = vmatpush3.bf16.msra.mxu1 %v2177_v46 }
 0x429   :  { %1610 = vmatprep.subr.bf16.mxu0 %v2711_v61  ;;  %2074 = vmatprep.subr.bf16.mxu1 %v2239_v1 }
 0x42c   :  { %1611 = vmatpush1.bf16.msra.mxu0 %v2717_v62  ;;  %2075 = vmatpush3.bf16.msra.mxu1 %v2178_v47 }
 0x4ce   :  { %v1348_v49 = vpop.f32.mrf.mxu0  ;;  %v1389_v6 = vpop.f32.mrf.mxu1 }
 0x4cf   :  { %v1401_v7 = vadd.f32 %v1398_v48, %v1348_v49  ;;  %v1422_v5 = vadd.f32 %v2469_v56, %v1389_v6  ;;  %v1900_v56 = vld [vmem:[%s2828_s0 + $0x3c] sm:$0xff] }
 0x4d0   :  { %v1350_v50 = vpop.f32.mrf.mxu0  ;;  %v2058_v51 = vpop.f32.mrf.mxu1  ;;  %v1680_v21 = vunpack.c.l.bf16 %v1900_v56  ;;  %v1681_v22 = vunpack.c.h.bf16 %v1900_v56 }
 0x4d1   :  { %v1872_v52 = vmul.f32 -1.442695, %v1401_v7  ;;  %v1408_v58 = vadd.f32 %v1399_v53, %v1350_v50 }
 0x4d2   :  { %v1352_v54 = vpop.f32.mrf.mxu0  ;;  %v1392_v55 = vpop.f32.mrf.mxu1 }
 0x4d3   :  { %2219 = vpow2.f32 %v1872_v52  ;;  %v1873_v59 = vmul.f32 -1.442695, %v1408_v58 }
 0x4d4   :  { %v1353_v57 = vpop.f32.mrf.mxu0  ;;  %v2059_v1 = vpop.f32.mrf.mxu1 }
 0x4d5   :  { %2221 = vpow2.f32 %v1873_v59 }
 0x4e0   :  { %v2220_v60 = vpop.eup %2219 }
 0x4e1   :  { %v1405_v61 = vadd.f32 1.0, %v2220_v60 }
 0x4e2   :  { %v2222_v62 = vpop.eup %2221 }
 0x4e3   :  { %2223 = vrcp.f32 %v1405_v61  ;;  %v1412_v63 = vadd.f32 1.0, %v2222_v62 }
 0x4e5   :  { %2225 = vrcp.f32 %v1412_v63 }
 0x4f0   :  { %v2224_v8 = vpop.eup %2223 }
 0x4f1   :  { %v1423_v9 = vmul.f32 %v2224_v8, %v1422_v5 }
 0x4f2   :  { %v2226_v0 = vpop.eup %2225 }
 0x4f3   :  { %v1424_v10 = vadd.f32 %v1423_v9, %v1400_v4  ;;  %v1426_v12 = vsub.f32 1.0, %v2226_v0  ;;  %v1428_v17 = vmul.f32 %v2226_v0, %v2737_v35  ;;  %v1904_v35 = vld [vmem:[%s2829_s3] ss:$0 sm:$0xff] }
 0x4f5   :  { %2227 = vtanh.f32 %v1424_v10 }
 0x502   :  { %v2228_v14 = vpop.eup %2227 }
 0x503   :  { %v1427_v15 = vmul.f32 %v2228_v14, %v1426_v12 }
 0x505   :  { %v1429_v18 = vadd.f32 %v1428_v17, %v1427_v15 }
 0x507   :  { %v1431_v19 = vpack.c.bf16 %v1429_v18, %v1429_v18 }
 0x509   :  { %1875 = vst [vmem:[%s2830_s4 + $0x10] sm:$0xf] %v1431_v19  ;;  %1629 = vmatmul.mubr.bf16.vlgmr.msra.gmra.mxu0 %v1431_v19  ;;  %2077 = vmatmul.mubr.bf16.vlgmr.msra.gmra.mxu1 %v1431_v19 }
 0x5c9   :  { %v1630_v23 = vpop.f32.mrf.mxu0  ;;  %v1671_v24 = vpop.f32.mrf.mxu1 }
 0x5ca   :  { %v1683_v11 = vadd.f32 %v1680_v21, %v1630_v23  ;;  %v1704_v38 = vadd.f32 %v1904_v35, %v1671_v24 }
 0x5cb   :  { %v1632_v13 = vpop.f32.mrf.mxu0  ;;  %v2078_v16 = vpop.f32.mrf.mxu1 }
 0x5cc   :  { %v1902_v20 = vmul.f32 -1.442695, %v1683_v11  ;;  %v1690_v29 = vadd.f32 %v1681_v22, %v1632_v13 }
 0x5cd   :  { %v1634_v25 = vpop.f32.mrf.mxu0  ;;  %v1674_v26 = vpop.f32.mrf.mxu1 }
 0x5ce   :  { %2229 = vpow2.f32 %v1902_v20  ;;  %v1903_v30 = vmul.f32 -1.442695, %v1690_v29 }
 0x5cf   :  { %v1635_v27 = vpop.f32.mrf.mxu0  ;;  %v2079_v28 = vpop.f32.mrf.mxu1 }
 0x5d0   :  { %2231 = vpow2.f32 %v1903_v30 }
 0x5db   :  { %v2230_v31 = vpop.eup %2229 }
 0x5dc   :  { %v1687_v32 = vadd.f32 1.0, %v2230_v31 }
 0x5dd   :  { %v2232_v33 = vpop.eup %2231 }
 0x5de   :  { %2233 = vrcp.f32 %v1687_v32  ;;  %v1694_v36 = vadd.f32 1.0, %v2232_v33 }
 0x5e0   :  { %2235 = vrcp.f32 %v1694_v36 }
 0x5eb   :  { %v2234_v39 = vpop.eup %2233 }
 0x5ec   :  { %v1705_v2 = vmul.f32 %v2234_v39, %v1704_v38 }
 0x5ed   :  { %v2236_v41 = vpop.eup %2235 }
 0x5ee   :  { %v1706_v40 = vadd.f32 %v1705_v2, %v1682_v37  ;;  %v1708_v42 = vsub.f32 1.0, %v2236_v41  ;;  %v1710_v45 = vmul.f32 %v2236_v41, %v1429_v18 }
 0x5f0   :  { %2237 = vtanh.f32 %v1706_v40 }
 0x5fd   :  { %v2238_v43 = vpop.eup %2237 }
 0x5fe   :  { %v1709_v44 = vmul.f32 %v2238_v43, %v1708_v42 }
 0x600   :  { %v1711_v46 = vadd.f32 %v1710_v45, %v1709_v44 }
 0x602   :  { %v1713_v47 = vpack.c.bf16 %v1711_v46, %v1711_v46  ;;  %1720 = vst [vmem:[%s2831_s5] sm:$0xff] %v1711_v46 }
 0x604   :  { %1905 = vst [vmem:[%s2830_s4 + $0x14] sm:$0xf] %v1713_v47 }

</bundles_post_ra>
